<compile_context>
chip_gen: v5e
topology: v5e:2x2
jax: 0.10.0
libtpu: 0.0.40
codegen_flags: <defaults>
</compile_context>

<pallas_src>
import functools

import jax
import jax.numpy as jnp
from jax.experimental import pallas as pl
from jax.experimental.pallas import tpu as pltpu

KSIZE = 7
PAD = 3  # KSIZE // 2


def _round_up(x, m):
    return (x + m - 1) // m * m


def spc_kernel(x_hbm, w_ref, o_ref, xbuf, sem, *, hwp, t_d, c_in):
    """One (batch sample, depth tile) grid step.

    x_hbm : (N, C_in, D*HWp)         unpadded input, resident in HBM
    w_ref : (KSIZE, C_out, C_in)     per-tap weights (VMEM, resident)
    o_ref : (C_out, T_D*HWp)         lane-dense output tile (VMEM)
    xbuf  : (2, C_in, (T_D+6)*HWp)   double-buffered halo'd windows
    sem   : (3, 2)                   DMA sems: [{body, lead, trail}, slot]
    """
    b = pl.program_id(0)
    t = pl.program_id(1)
    num_t = pl.num_programs(1)

    body = t_d * hwp      # lanes holding this tile's own depth rows
    halo = PAD * hwp      # lanes holding one 3-row depth halo

    # ---- window DMAs: body always; halos only where they are in range ----
    def body_copy(ti, slot):
        src = pl.multiple_of(ti * body, 128)
        return pltpu.make_async_copy(
            x_hbm.at[b, :, pl.ds(src, body)],
            xbuf.at[slot, :, pl.ds(halo, body)],
            sem.at[0, slot])

    def lead_copy(ti, slot):
        src = pl.multiple_of(ti * body - halo, 128)
        return pltpu.make_async_copy(
            x_hbm.at[b, :, pl.ds(src, halo)],
            xbuf.at[slot, :, pl.ds(0, halo)],
            sem.at[1, slot])

    def trail_copy(ti, slot):
        src = pl.multiple_of((ti + 1) * body, 128)
        return pltpu.make_async_copy(
            x_hbm.at[b, :, pl.ds(src, halo)],
            xbuf.at[slot, :, pl.ds(halo + body, halo)],
            sem.at[2, slot])

    def start_window(ti, slot):
        body_copy(ti, slot).start()

        @pl.when(ti > 0)
        def _():
            lead_copy(ti, slot).start()

        @pl.when(ti < num_t - 1)
        def _():
            trail_copy(ti, slot).start()

    def wait_window(ti, slot):
        body_copy(ti, slot).wait()

        @pl.when(ti > 0)
        def _():
            lead_copy(ti, slot).wait()

        @pl.when(ti < num_t - 1)
        def _():
            trail_copy(ti, slot).wait()

    slot = t % 2

    # Prime the DMA pipeline at the first depth tile of each sample (keeps the
    # batch axis safely "parallel" for megacore sharding).
    # TODO(synk): prefetch across the sample boundary instead (saves one
    # exposed window DMA per sample) once shard-boundary bookkeeping is added.
    @pl.when(t == 0)
    def _():
        start_window(t, slot)

    # Prefetch the next tile's halo'd window while computing this one.
    # TODO(synk): rolling buffer to reuse the 6 overlap rows already in VMEM
    # instead of re-fetching them from HBM each tile.
    @pl.when(t + 1 < num_t)
    def _():
        start_window(t + 1, 1 - slot)

    wait_window(t, slot)

    xw = xbuf.at[slot]    # Ref view — no VMEM->vreg materialisation.

    # Depth padding (=3): zero the halo rows that were never DMAed.
    @pl.when(t == 0)
    def _():
        xw[:, 0:halo] = jnp.zeros((c_in, halo), dtype=xbuf.dtype)

    @pl.when(t == num_t - 1)
    def _():
        xw[:, halo + body:2 * halo + body] = jnp.zeros((c_in, halo),
                                                       dtype=xbuf.dtype)

    # 7 per-tap accumulating MXU dots; every tap slice starts at a lane offset
    # that is a multiple of 128 (k*HWp), so taps stream straight from VMEM and
    # no im2col operand is ever stored.  f32 accumulation, single final store.
    acc = jnp.dot(w_ref[0], xw[:, 0:body], preferred_element_type=jnp.float32)
    for k in range(1, KSIZE):
        tap = xw[:, k * hwp:k * hwp + body]
        acc = acc + jnp.dot(w_ref[k], tap, preferred_element_type=jnp.float32)
    o_ref[...] = acc.astype(o_ref.dtype)


def spc_forward(x, weight, *, d_tile=None, compute_dtype=None,
                vmem_budget_bytes=None):
    """Conv3d(C_in -> C_out, kernel=(7,1,1), padding=(3,0,0), bias=False).

    x      : (N, C_in, D, H, W)
    weight : (C_out, C_in, 7)   (PyTorch (C_out, C_in, 7, 1, 1) squeezed)
    """
    n, c_in, d, h, w = x.shape
    c_out = weight.shape[0]
    hw = h * w
    hwp = _round_up(hw, 128)             # lane-dense last dim
    out_dtype = x.dtype
    if compute_dtype is None:
        compute_dtype = x.dtype

    # Input glue: reshape only (free).  HW is padded to a lane multiple only
    # when needed; the depth halo is handled entirely inside the kernel.
    # TODO(synk): fold the HW->HWp padding into per-depth-row strided DMAs so
    # the hw % 128 != 0 case also avoids this extra HBM pass.
    x4 = x.reshape(n, c_in, d, hw)
    if hwp != hw:
        x4 = jnp.pad(x4, ((0, 0), (0, 0), (0, 0), (0, hwp - hw)))
    x_flat = x4.reshape(n, c_in, d * hwp)
    if x_flat.dtype != compute_dtype:
        x_flat = x_flat.astype(compute_dtype)

    # Per-tap weights: w_taps[k] = W[:, :, k]  -> (KSIZE, C_out, C_in).
    w_taps = jnp.transpose(weight, (2, 0, 1)).astype(compute_dtype)

    in_item = jnp.dtype(compute_dtype).itemsize
    out_item = jnp.dtype(out_dtype).itemsize

    def working_set_bytes(cand):
        return (2 * c_in * (cand + 2 * PAD) * hwp * in_item     # xbuf (2 slots)
                + 2 * c_out * cand * hwp * out_item             # out tile (dbl buf)
                + c_out * cand * hwp * 4                        # f32 accumulator
                + 2 * KSIZE * _round_up(c_out, 8)
                * _round_up(c_in, 128) * in_item)               # weights (padded)

    if d_tile is None:
        if vmem_budget_bytes is None:
            # Generation-aware budget: ~60% of this chip's physical VMEM
            # (≈38 MiB on v7x, ≈77 MiB on v5e/v6e), capped at 96 MiB.
            try:
                cap = getattr(pltpu.get_tpu_info(), "vmem_capacity_bytes", None)
            except Exception:
                cap = None
            if not cap:
                cap = 64 * 1024 * 1024
            vmem_budget_bytes = min(int(cap * 0.6), 96 * 1024 * 1024)
        d_tile = 0
        for cand in range(d, 0, -1):
            if d % cand:
                continue
            if cand < PAD and cand != d:   # halo DMAs need >= PAD valid rows
                continue
            if working_set_bytes(cand) <= vmem_budget_bytes:
                d_tile = cand
                break
        if d_tile == 0:
            raise ValueError(
                f"no depth tile fits the VMEM budget ({vmem_budget_bytes} B); "
                "reduce H*W or channel counts")
    # TODO(synk): ragged depth tiling (pl.cdiv + masked last tile) so D with
    # poor divisors does not force tiny tiles.
    if d % d_tile != 0:
        raise ValueError("d_tile must divide D")
    if d_tile < PAD and d_tile != d:
        raise ValueError(f"d_tile must be >= {PAD} (or == D)")
    num_t = d // d_tile

    # Scoped-VMEM limit sized to the real working set (+ headroom) so large
    # tiles compile on v6e and we stay inside v5e's 16 MiB default / v7x's
    # 64 MiB physical VMEM.
    vmem_limit = int(min(working_set_bytes(d_tile) + (4 << 20), 128 << 20))

    kernel = functools.partial(spc_kernel, hwp=hwp, t_d=d_tile, c_in=c_in)

    # TODO(synk): on v7x with N == 1, add a parallel split of the depth-tile
    # axis so both TensorCores are fed (prime-per-shard already supports it).
    out_flat = pl.pallas_call(
        kernel,
        out_shape=jax.ShapeDtypeStruct((n, c_out, d * hwp), out_dtype),
        grid_spec=pltpu.PrefetchScalarGridSpec(
            num_scalar_prefetch=0,
            grid=(n, num_t),
            in_specs=[
                pl.BlockSpec(memory_space=pl.ANY),                  # x stays in HBM
                pl.BlockSpec((KSIZE, c_out, c_in), lambda b, t: (0, 0, 0)),
            ],
            out_specs=pl.BlockSpec((None, c_out, d_tile * hwp),
                                   lambda b, t: (b, 0, t)),
            scratch_shapes=[
                pltpu.VMEM((2, c_in, (d_tile + 2 * PAD) * hwp), compute_dtype),
                pltpu.SemaphoreType.DMA((3, 2)),
            ],
        ),
        compiler_params=pltpu.CompilerParams(
            dimension_semantics=("parallel", "arbitrary"),
            vmem_limit_bytes=vmem_limit),
    )(x_flat, w_taps)

    out = out_flat.reshape(n, c_out, d, hwp)[..., :hw]
    return out.reshape(n, c_out, d, h, w)


def spc_reference(x, weight):
    """Pure-JAX reference of Conv3d(kernel=(7,1,1), padding=(3,0,0), bias=False)."""
    n, c_in, d, h, w = x.shape
    x_pad = jnp.pad(x, ((0, 0), (0, 0), (PAD, PAD), (0, 0), (0, 0)))
    out = jnp.zeros((n, weight.shape[0], d, h, w), jnp.float32)
    for k in range(KSIZE):
        xk = x_pad[:, :, k:k + d, :, :]               # (N, C_in, D, H, W)
        wk = weight[:, :, k]                          # (C_out, C_in)
        out = out + jnp.einsum('oc,ncdhw->nodhw', wk, xk)
    return out


if __name__ == "__main__":
    key = jax.random.PRNGKey(0)
    k_x, k_w = jax.random.split(key)

    N, C_IN, C_OUT, D, H, W = 2, 4, 8, 8, 16, 16      # HW = 256 (2 lane tiles)
    x = jax.random.normal(k_x, (N, C_IN, D, H, W), dtype=jnp.float32)
    # PyTorch Conv3d weight is (C_out, C_in, 7, 1, 1); spatial 1x1 dims squeezed.
    weight = (jax.random.normal(k_w, (C_OUT, C_IN, KSIZE), dtype=jnp.float32)
              * 0.1)

    ref = spc_reference(x, weight)

    # f32 compute, depth tiled D=8 -> 2 tiles of 4 (exercises the
    # double-buffered halo-window DMA + in-kernel halo zero-fill path).
    out = jax.block_until_ready(spc_forward(x, weight, d_tile=4))
    assert out.shape == (N, C_OUT, D, H, W)
    assert jnp.allclose(out, ref, atol=1e-2, rtol=1e-2), "f32 mismatch vs reference"

    # bf16 compute path (v6e/v7x MXU-friendly), f32 accumulation and output;
    # auto tile chooser picks the full depth here (single-tile path).
    out_bf16 = jax.block_until_ready(
        spc_forward(x, weight, compute_dtype=jnp.bfloat16))
    assert jnp.allclose(out_bf16, ref, atol=5e-2, rtol=5e-2), "bf16 mismatch vs reference"

    print("KERNEL_OK")
</pallas_src>

<mosaic_0001>
module attributes {stable_mosaic.version = 11 : i64} {
  func.func @spc_kernel(%arg0: i32, %arg1: i32, %arg2: memref<2x4x2048xf32, #tpu.memory_space<any>>, %arg3: memref<7x8x4xf32, #tpu.memory_space<vmem>>, %arg4: memref<1x8x1024xf32, #tpu.memory_space<vmem>>, %arg5: memref<2x4x2560xf32, #tpu.memory_space<vmem>>, %arg6: memref<3x2x!tpu.dma_semaphore, #tpu.memory_space<semaphore_mem>>) attributes {dimension_semantics = [#tpu.dimension_semantics<parallel>, #tpu.dimension_semantics<arbitrary>], iteration_bounds = array<i64: 2, 2>, scalar_prefetch = 0 : i64, scratch_operands = 2 : i64, tpu.core_type = #tpu.core_type<tc>, window_params = [{}, {pipeline_mode = #tpu.pipeline_mode<synchronous>, transform_indices = @transform_1, window_bounds = array<i64: 7, 8, 4>}, {transform_indices = @transform_2, window_bounds = array<i64: 1, 8, 1024>}]} {
    %c2_i32 = arith.constant 2 : i32
    %c0_i32 = arith.constant 0 : i32
    %0 = arith.cmpi eq, %c2_i32, %c0_i32 : i32
    %c1_i32 = arith.constant 1 : i32
    %1 = arith.select %0, %c1_i32, %c2_i32 : i32
    %2 = arith.remsi %arg1, %1 : i32
    %c0_i32_0 = arith.constant 0 : i32
    %3 = arith.cmpi ne, %2, %c0_i32_0 : i32
    %c0_i32_1 = arith.constant 0 : i32
    %4 = arith.cmpi slt, %2, %c0_i32_1 : i32
    %c0_i32_2 = arith.constant 0 : i32
    %5 = arith.cmpi slt, %1, %c0_i32_2 : i32
    %6 = arith.xori %4, %5 : i1
    %7 = arith.andi %6, %3 : i1
    %8 = arith.addi %2, %1 : i32
    %9 = arith.select %7, %8, %2 : i32
    %c0_i32_3 = arith.constant 0 : i32
    %10 = arith.cmpi eq, %arg1, %c0_i32_3 : i32
    %11 = arith.extui %10 : i1 to i32
    %c0_i32_4 = arith.constant 0 : i32
    %12 = arith.cmpi ne, %11, %c0_i32_4 : i32
    scf.if %12 {
      %c1024_i32_64 = arith.constant 1024 : i32
      %88 = arith.muli %arg1, %c1024_i32_64 : i32
      %89 = tpu.assume_multiple %88, 128 : i32
      %c0_i32_65 = arith.constant 0 : i32
      %c0_i32_66 = arith.constant 0 : i32
      %90 = tpu.memref_slice %arg2[%arg0, %c0_i32_66, %89] : memref<2x4x2048xf32, #tpu.memory_space<any>> -> memref<1x4x1024xf32, #tpu.memory_space<any>>
      %91 = tpu.memref_squeeze %90 : memref<1x4x1024xf32, #tpu.memory_space<any>> -> memref<4x1024xf32, #tpu.memory_space<any>>
      %c0_i32_67 = arith.constant 0 : i32
      %c768_i32_68 = arith.constant 768 : i32
      %92 = tpu.memref_slice %arg5[%9, %c0_i32_67, %c768_i32_68] : memref<2x4x2560xf32, #tpu.memory_space<vmem>> -> memref<1x4x1024xf32, #tpu.memory_space<vmem>>
      %93 = tpu.memref_squeeze %92 : memref<1x4x1024xf32, #tpu.memory_space<vmem>> -> memref<4x1024xf32, #tpu.memory_space<vmem>>
      %94 = tpu.memref_slice %arg6[%c0_i32_65, %9] : memref<3x2x!tpu.dma_semaphore, #tpu.memory_space<semaphore_mem>> -> memref<1x1x!tpu.dma_semaphore, #tpu.memory_space<semaphore_mem>>
      %95 = tpu.memref_squeeze %94 : memref<1x1x!tpu.dma_semaphore, #tpu.memory_space<semaphore_mem>> -> memref<!tpu.dma_semaphore, #tpu.memory_space<semaphore_mem>>
      tpu.enqueue_dma source(%91 : memref<4x1024xf32, #tpu.memory_space<any>>) target(%93 : memref<4x1024xf32, #tpu.memory_space<vmem>>) target_semaphore(%95 : memref<!tpu.dma_semaphore, #tpu.memory_space<semaphore_mem>>)
      %c0_i32_69 = arith.constant 0 : i32
      %96 = arith.cmpi sgt, %arg1, %c0_i32_69 : i32
      %97 = arith.extui %96 : i1 to i32
      %c0_i32_70 = arith.constant 0 : i32
      %98 = arith.cmpi ne, %97, %c0_i32_70 : i32
      scf.if %98 {
        %c1024_i32_73 = arith.constant 1024 : i32
        %102 = arith.muli %arg1, %c1024_i32_73 : i32
        %c768_i32_74 = arith.constant 768 : i32
        %103 = arith.subi %102, %c768_i32_74 : i32
        %104 = tpu.assume_multiple %103, 128 : i32
        %c1_i32_75 = arith.constant 1 : i32
        %c0_i32_76 = arith.constant 0 : i32
        %105 = tpu.memref_slice %arg2[%arg0, %c0_i32_76, %104] : memref<2x4x2048xf32, #tpu.memory_space<any>> -> memref<1x4x768xf32, #tpu.memory_space<any>>
        %106 = tpu.memref_squeeze %105 : memref<1x4x768xf32, #tpu.memory_space<any>> -> memref<4x768xf32, #tpu.memory_space<any>>
        %c0_i32_77 = arith.constant 0 : i32
        %c0_i32_78 = arith.constant 0 : i32
        %107 = tpu.memref_slice %arg5[%9, %c0_i32_77, %c0_i32_78] : memref<2x4x2560xf32, #tpu.memory_space<vmem>> -> memref<1x4x768xf32, #tpu.memory_space<vmem>>
        %108 = tpu.memref_squeeze %107 : memref<1x4x768xf32, #tpu.memory_space<vmem>> -> memref<4x768xf32, #tpu.memory_space<vmem>>
        %109 = tpu.memref_slice %arg6[%c1_i32_75, %9] : memref<3x2x!tpu.dma_semaphore, #tpu.memory_space<semaphore_mem>> -> memref<1x1x!tpu.dma_semaphore, #tpu.memory_space<semaphore_mem>>
        %110 = tpu.memref_squeeze %109 : memref<1x1x!tpu.dma_semaphore, #tpu.memory_space<semaphore_mem>> -> memref<!tpu.dma_semaphore, #tpu.memory_space<semaphore_mem>>
        tpu.enqueue_dma source(%106 : memref<4x768xf32, #tpu.memory_space<any>>) target(%108 : memref<4x768xf32, #tpu.memory_space<vmem>>) target_semaphore(%110 : memref<!tpu.dma_semaphore, #tpu.memory_space<semaphore_mem>>)
      } else {
      }
      %c1_i32_71 = arith.constant 1 : i32
      %99 = arith.cmpi slt, %arg1, %c1_i32_71 : i32
      %100 = arith.extui %99 : i1 to i32
      %c0_i32_72 = arith.constant 0 : i32
      %101 = arith.cmpi ne, %100, %c0_i32_72 : i32
      scf.if %101 {
        %c1_i32_73 = arith.constant 1 : i32
        %102 = arith.addi %arg1, %c1_i32_73 : i32
        %c1024_i32_74 = arith.constant 1024 : i32
        %103 = arith.muli %102, %c1024_i32_74 : i32
        %104 = tpu.assume_multiple %103, 128 : i32
        %c2_i32_75 = arith.constant 2 : i32
        %c0_i32_76 = arith.constant 0 : i32
        %105 = tpu.memref_slice %arg2[%arg0, %c0_i32_76, %104] : memref<2x4x2048xf32, #tpu.memory_space<any>> -> memref<1x4x768xf32, #tpu.memory_space<any>>
        %106 = tpu.memref_squeeze %105 : memref<1x4x768xf32, #tpu.memory_space<any>> -> memref<4x768xf32, #tpu.memory_space<any>>
        %c0_i32_77 = arith.constant 0 : i32
        %c1792_i32 = arith.constant 1792 : i32
        %107 = tpu.memref_slice %arg5[%9, %c0_i32_77, %c1792_i32] : memref<2x4x2560xf32, #tpu.memory_space<vmem>> -> memref<1x4x768xf32, #tpu.memory_space<vmem>>
        %108 = tpu.memref_squeeze %107 : memref<1x4x768xf32, #tpu.memory_space<vmem>> -> memref<4x768xf32, #tpu.memory_space<vmem>>
        %109 = tpu.memref_slice %arg6[%c2_i32_75, %9] : memref<3x2x!tpu.dma_semaphore, #tpu.memory_space<semaphore_mem>> -> memref<1x1x!tpu.dma_semaphore, #tpu.memory_space<semaphore_mem>>
        %110 = tpu.memref_squeeze %109 : memref<1x1x!tpu.dma_semaphore, #tpu.memory_space<semaphore_mem>> -> memref<!tpu.dma_semaphore, #tpu.memory_space<semaphore_mem>>
        tpu.enqueue_dma source(%106 : memref<4x768xf32, #tpu.memory_space<any>>) target(%108 : memref<4x768xf32, #tpu.memory_space<vmem>>) target_semaphore(%110 : memref<!tpu.dma_semaphore, #tpu.memory_space<semaphore_mem>>)
      } else {
      }
    } else {
    }
    %c1_i32_5 = arith.constant 1 : i32
    %13 = arith.addi %arg1, %c1_i32_5 : i32
    %c2_i32_6 = arith.constant 2 : i32
    %14 = arith.cmpi slt, %13, %c2_i32_6 : i32
    %15 = arith.extui %14 : i1 to i32
    %c0_i32_7 = arith.constant 0 : i32
    %16 = arith.cmpi ne, %15, %c0_i32_7 : i32
    scf.if %16 {
      %c1_i32_64 = arith.constant 1 : i32
      %88 = arith.addi %arg1, %c1_i32_64 : i32
      %c1_i32_65 = arith.constant 1 : i32
      %89 = arith.subi %c1_i32_65, %9 : i32
      %c1024_i32_66 = arith.constant 1024 : i32
      %90 = arith.muli %88, %c1024_i32_66 : i32
      %91 = tpu.assume_multiple %90, 128 : i32
      %c0_i32_67 = arith.constant 0 : i32
      %c0_i32_68 = arith.constant 0 : i32
      %92 = tpu.memref_slice %arg2[%arg0, %c0_i32_68, %91] : memref<2x4x2048xf32, #tpu.memory_space<any>> -> memref<1x4x1024xf32, #tpu.memory_space<any>>
      %93 = tpu.memref_squeeze %92 : memref<1x4x1024xf32, #tpu.memory_space<any>> -> memref<4x1024xf32, #tpu.memory_space<any>>
      %c0_i32_69 = arith.constant 0 : i32
      %c768_i32_70 = arith.constant 768 : i32
      %94 = tpu.memref_slice %arg5[%89, %c0_i32_69, %c768_i32_70] : memref<2x4x2560xf32, #tpu.memory_space<vmem>> -> memref<1x4x1024xf32, #tpu.memory_space<vmem>>
      %95 = tpu.memref_squeeze %94 : memref<1x4x1024xf32, #tpu.memory_space<vmem>> -> memref<4x1024xf32, #tpu.memory_space<vmem>>
      %96 = tpu.memref_slice %arg6[%c0_i32_67, %89] : memref<3x2x!tpu.dma_semaphore, #tpu.memory_space<semaphore_mem>> -> memref<1x1x!tpu.dma_semaphore, #tpu.memory_space<semaphore_mem>>
      %97 = tpu.memref_squeeze %96 : memref<1x1x!tpu.dma_semaphore, #tpu.memory_space<semaphore_mem>> -> memref<!tpu.dma_semaphore, #tpu.memory_space<semaphore_mem>>
      tpu.enqueue_dma source(%93 : memref<4x1024xf32, #tpu.memory_space<any>>) target(%95 : memref<4x1024xf32, #tpu.memory_space<vmem>>) target_semaphore(%97 : memref<!tpu.dma_semaphore, #tpu.memory_space<semaphore_mem>>)
      %c0_i32_71 = arith.constant 0 : i32
      %98 = arith.cmpi sgt, %88, %c0_i32_71 : i32
      %99 = arith.extui %98 : i1 to i32
      %c0_i32_72 = arith.constant 0 : i32
      %100 = arith.cmpi ne, %99, %c0_i32_72 : i32
      scf.if %100 {
        %c1024_i32_75 = arith.constant 1024 : i32
        %104 = arith.muli %88, %c1024_i32_75 : i32
        %c768_i32_76 = arith.constant 768 : i32
        %105 = arith.subi %104, %c768_i32_76 : i32
        %106 = tpu.assume_multiple %105, 128 : i32
        %c1_i32_77 = arith.constant 1 : i32
        %c0_i32_78 = arith.constant 0 : i32
        %107 = tpu.memref_slice %arg2[%arg0, %c0_i32_78, %106] : memref<2x4x2048xf32, #tpu.memory_space<any>> -> memref<1x4x768xf32, #tpu.memory_space<any>>
        %108 = tpu.memref_squeeze %107 : memref<1x4x768xf32, #tpu.memory_space<any>> -> memref<4x768xf32, #tpu.memory_space<any>>
        %c0_i32_79 = arith.constant 0 : i32
        %c0_i32_80 = arith.constant 0 : i32
        %109 = tpu.memref_slice %arg5[%89, %c0_i32_79, %c0_i32_80] : memref<2x4x2560xf32, #tpu.memory_space<vmem>> -> memref<1x4x768xf32, #tpu.memory_space<vmem>>
        %110 = tpu.memref_squeeze %109 : memref<1x4x768xf32, #tpu.memory_space<vmem>> -> memref<4x768xf32, #tpu.memory_space<vmem>>
        %111 = tpu.memref_slice %arg6[%c1_i32_77, %89] : memref<3x2x!tpu.dma_semaphore, #tpu.memory_space<semaphore_mem>> -> memref<1x1x!tpu.dma_semaphore, #tpu.memory_space<semaphore_mem>>
        %112 = tpu.memref_squeeze %111 : memref<1x1x!tpu.dma_semaphore, #tpu.memory_space<semaphore_mem>> -> memref<!tpu.dma_semaphore, #tpu.memory_space<semaphore_mem>>
        tpu.enqueue_dma source(%108 : memref<4x768xf32, #tpu.memory_space<any>>) target(%110 : memref<4x768xf32, #tpu.memory_space<vmem>>) target_semaphore(%112 : memref<!tpu.dma_semaphore, #tpu.memory_space<semaphore_mem>>)
      } else {
      }
      %c1_i32_73 = arith.constant 1 : i32
      %101 = arith.cmpi slt, %88, %c1_i32_73 : i32
      %102 = arith.extui %101 : i1 to i32
      %c0_i32_74 = arith.constant 0 : i32
      %103 = arith.cmpi ne, %102, %c0_i32_74 : i32
      scf.if %103 {
        %c1_i32_75 = arith.constant 1 : i32
        %104 = arith.addi %88, %c1_i32_75 : i32
        %c1024_i32_76 = arith.constant 1024 : i32
        %105 = arith.muli %104, %c1024_i32_76 : i32
        %106 = tpu.assume_multiple %105, 128 : i32
        %c2_i32_77 = arith.constant 2 : i32
        %c0_i32_78 = arith.constant 0 : i32
        %107 = tpu.memref_slice %arg2[%arg0, %c0_i32_78, %106] : memref<2x4x2048xf32, #tpu.memory_space<any>> -> memref<1x4x768xf32, #tpu.memory_space<any>>
        %108 = tpu.memref_squeeze %107 : memref<1x4x768xf32, #tpu.memory_space<any>> -> memref<4x768xf32, #tpu.memory_space<any>>
        %c0_i32_79 = arith.constant 0 : i32
        %c1792_i32 = arith.constant 1792 : i32
        %109 = tpu.memref_slice %arg5[%89, %c0_i32_79, %c1792_i32] : memref<2x4x2560xf32, #tpu.memory_space<vmem>> -> memref<1x4x768xf32, #tpu.memory_space<vmem>>
        %110 = tpu.memref_squeeze %109 : memref<1x4x768xf32, #tpu.memory_space<vmem>> -> memref<4x768xf32, #tpu.memory_space<vmem>>
        %111 = tpu.memref_slice %arg6[%c2_i32_77, %89] : memref<3x2x!tpu.dma_semaphore, #tpu.memory_space<semaphore_mem>> -> memref<1x1x!tpu.dma_semaphore, #tpu.memory_space<semaphore_mem>>
        %112 = tpu.memref_squeeze %111 : memref<1x1x!tpu.dma_semaphore, #tpu.memory_space<semaphore_mem>> -> memref<!tpu.dma_semaphore, #tpu.memory_space<semaphore_mem>>
        tpu.enqueue_dma source(%108 : memref<4x768xf32, #tpu.memory_space<any>>) target(%110 : memref<4x768xf32, #tpu.memory_space<vmem>>) target_semaphore(%112 : memref<!tpu.dma_semaphore, #tpu.memory_space<semaphore_mem>>)
      } else {
      }
    } else {
    }
    %c1024_i32 = arith.constant 1024 : i32
    %17 = arith.muli %arg1, %c1024_i32 : i32
    %18 = tpu.assume_multiple %17, 128 : i32
    %c0_i32_8 = arith.constant 0 : i32
    %c0_i32_9 = arith.constant 0 : i32
    %19 = tpu.memref_slice %arg2[%arg0, %c0_i32_9, %18] : memref<2x4x2048xf32, #tpu.memory_space<any>> -> memref<1x4x1024xf32, #tpu.memory_space<any>>
    %20 = tpu.memref_squeeze %19 : memref<1x4x1024xf32, #tpu.memory_space<any>> -> memref<4x1024xf32, #tpu.memory_space<any>>
    %c0_i32_10 = arith.constant 0 : i32
    %c768_i32 = arith.constant 768 : i32
    %21 = tpu.memref_slice %arg5[%9, %c0_i32_10, %c768_i32] : memref<2x4x2560xf32, #tpu.memory_space<vmem>> -> memref<1x4x1024xf32, #tpu.memory_space<vmem>>
    %22 = tpu.memref_squeeze %21 : memref<1x4x1024xf32, #tpu.memory_space<vmem>> -> memref<4x1024xf32, #tpu.memory_space<vmem>>
    %23 = tpu.memref_slice %arg6[%c0_i32_8, %9] : memref<3x2x!tpu.dma_semaphore, #tpu.memory_space<semaphore_mem>> -> memref<1x1x!tpu.dma_semaphore, #tpu.memory_space<semaphore_mem>>
    %24 = tpu.memref_squeeze %23 : memref<1x1x!tpu.dma_semaphore, #tpu.memory_space<semaphore_mem>> -> memref<!tpu.dma_semaphore, #tpu.memory_space<semaphore_mem>>
    tpu.wait_dma2 semaphore(%24 : memref<!tpu.dma_semaphore, #tpu.memory_space<semaphore_mem>>) src(%20 : memref<4x1024xf32, #tpu.memory_space<any>>) dst(%22 : memref<4x1024xf32, #tpu.memory_space<vmem>>)
    %c0_i32_11 = arith.constant 0 : i32
    %25 = arith.cmpi sgt, %arg1, %c0_i32_11 : i32
    %26 = arith.extui %25 : i1 to i32
    %c0_i32_12 = arith.constant 0 : i32
    %27 = arith.cmpi ne, %26, %c0_i32_12 : i32
    scf.if %27 {
      %c1024_i32_64 = arith.constant 1024 : i32
      %88 = arith.muli %arg1, %c1024_i32_64 : i32
      %c768_i32_65 = arith.constant 768 : i32
      %89 = arith.subi %88, %c768_i32_65 : i32
      %90 = tpu.assume_multiple %89, 128 : i32
      %c1_i32_66 = arith.constant 1 : i32
      %c0_i32_67 = arith.constant 0 : i32
      %91 = tpu.memref_slice %arg2[%arg0, %c0_i32_67, %90] : memref<2x4x2048xf32, #tpu.memory_space<any>> -> memref<1x4x768xf32, #tpu.memory_space<any>>
      %92 = tpu.memref_squeeze %91 : memref<1x4x768xf32, #tpu.memory_space<any>> -> memref<4x768xf32, #tpu.memory_space<any>>
      %c0_i32_68 = arith.constant 0 : i32
      %c0_i32_69 = arith.constant 0 : i32
      %93 = tpu.memref_slice %arg5[%9, %c0_i32_68, %c0_i32_69] : memref<2x4x2560xf32, #tpu.memory_space<vmem>> -> memref<1x4x768xf32, #tpu.memory_space<vmem>>
      %94 = tpu.memref_squeeze %93 : memref<1x4x768xf32, #tpu.memory_space<vmem>> -> memref<4x768xf32, #tpu.memory_space<vmem>>
      %95 = tpu.memref_slice %arg6[%c1_i32_66, %9] : memref<3x2x!tpu.dma_semaphore, #tpu.memory_space<semaphore_mem>> -> memref<1x1x!tpu.dma_semaphore, #tpu.memory_space<semaphore_mem>>
      %96 = tpu.memref_squeeze %95 : memref<1x1x!tpu.dma_semaphore, #tpu.memory_space<semaphore_mem>> -> memref<!tpu.dma_semaphore, #tpu.memory_space<semaphore_mem>>
      tpu.wait_dma2 semaphore(%96 : memref<!tpu.dma_semaphore, #tpu.memory_space<semaphore_mem>>) src(%92 : memref<4x768xf32, #tpu.memory_space<any>>) dst(%94 : memref<4x768xf32, #tpu.memory_space<vmem>>)
    } else {
    }
    %c1_i32_13 = arith.constant 1 : i32
    %28 = arith.cmpi slt, %arg1, %c1_i32_13 : i32
    %29 = arith.extui %28 : i1 to i32
    %c0_i32_14 = arith.constant 0 : i32
    %30 = arith.cmpi ne, %29, %c0_i32_14 : i32
    scf.if %30 {
      %c1_i32_64 = arith.constant 1 : i32
      %88 = arith.addi %arg1, %c1_i32_64 : i32
      %c1024_i32_65 = arith.constant 1024 : i32
      %89 = arith.muli %88, %c1024_i32_65 : i32
      %90 = tpu.assume_multiple %89, 128 : i32
      %c2_i32_66 = arith.constant 2 : i32
      %c0_i32_67 = arith.constant 0 : i32
      %91 = tpu.memref_slice %arg2[%arg0, %c0_i32_67, %90] : memref<2x4x2048xf32, #tpu.memory_space<any>> -> memref<1x4x768xf32, #tpu.memory_space<any>>
      %92 = tpu.memref_squeeze %91 : memref<1x4x768xf32, #tpu.memory_space<any>> -> memref<4x768xf32, #tpu.memory_space<any>>
      %c0_i32_68 = arith.constant 0 : i32
      %c1792_i32 = arith.constant 1792 : i32
      %93 = tpu.memref_slice %arg5[%9, %c0_i32_68, %c1792_i32] : memref<2x4x2560xf32, #tpu.memory_space<vmem>> -> memref<1x4x768xf32, #tpu.memory_space<vmem>>
      %94 = tpu.memref_squeeze %93 : memref<1x4x768xf32, #tpu.memory_space<vmem>> -> memref<4x768xf32, #tpu.memory_space<vmem>>
      %95 = tpu.memref_slice %arg6[%c2_i32_66, %9] : memref<3x2x!tpu.dma_semaphore, #tpu.memory_space<semaphore_mem>> -> memref<1x1x!tpu.dma_semaphore, #tpu.memory_space<semaphore_mem>>
      %96 = tpu.memref_squeeze %95 : memref<1x1x!tpu.dma_semaphore, #tpu.memory_space<semaphore_mem>> -> memref<!tpu.dma_semaphore, #tpu.memory_space<semaphore_mem>>
      tpu.wait_dma2 semaphore(%96 : memref<!tpu.dma_semaphore, #tpu.memory_space<semaphore_mem>>) src(%92 : memref<4x768xf32, #tpu.memory_space<any>>) dst(%94 : memref<4x768xf32, #tpu.memory_space<vmem>>)
    } else {
    }
    %c0_i32_15 = arith.constant 0 : i32
    %31 = arith.cmpi eq, %arg1, %c0_i32_15 : i32
    %32 = arith.extui %31 : i1 to i32
    %c0_i32_16 = arith.constant 0 : i32
    %33 = arith.cmpi ne, %32, %c0_i32_16 : i32
    scf.if %33 {
      %cst_64 = arith.constant 0.000000e+00 : f32
      %88 = vector.broadcast %cst_64 : f32 to vector<4x768xf32>
      %c0_i32_65 = arith.constant 0 : i32
      %c0_i32_66 = arith.constant 0 : i32
      %89 = tpu.memref_slice %arg5[%9, %c0_i32_65, %c0_i32_66] : memref<2x4x2560xf32, #tpu.memory_space<vmem>> -> memref<1x4x2560xf32, #tpu.memory_space<vmem>>
      %90 = tpu.memref_squeeze %89 : memref<1x4x2560xf32, #tpu.memory_space<vmem>> -> memref<4x2560xf32, #tpu.memory_space<vmem>>
      %c0_67 = arith.constant 0 : index
      %c0_68 = arith.constant 0 : index
      %91 = vector.load %90[%c0_67, %c0_68] : memref<4x2560xf32, #tpu.memory_space<vmem>>, vector<4x768xf32>
      tpu.vector_store %90[%c0_67, %c0_68], %88 {strides = array<i32>} : memref<4x2560xf32, #tpu.memory_space<vmem>>, vector<4x768xf32>,
    } else {
    }
    %c1_i32_17 = arith.constant 1 : i32
    %34 = arith.cmpi eq, %arg1, %c1_i32_17 : i32
    %35 = arith.extui %34 : i1 to i32
    %c0_i32_18 = arith.constant 0 : i32
    %36 = arith.cmpi ne, %35, %c0_i32_18 : i32
    scf.if %36 {
      %cst_64 = arith.constant 0.000000e+00 : f32
      %88 = vector.broadcast %cst_64 : f32 to vector<4x768xf32>
      %c0_i32_65 = arith.constant 0 : i32
      %c0_i32_66 = arith.constant 0 : i32
      %89 = tpu.memref_slice %arg5[%9, %c0_i32_65, %c0_i32_66] : memref<2x4x2560xf32, #tpu.memory_space<vmem>> -> memref<1x4x2560xf32, #tpu.memory_space<vmem>>
      %90 = tpu.memref_squeeze %89 : memref<1x4x2560xf32, #tpu.memory_space<vmem>> -> memref<4x2560xf32, #tpu.memory_space<vmem>>
      %c0_67 = arith.constant 0 : index
      %c1792 = arith.constant 1792 : index
      %91 = vector.load %90[%c0_67, %c1792] : memref<4x2560xf32, #tpu.memory_space<vmem>>, vector<4x768xf32>
      tpu.vector_store %90[%c0_67, %c1792], %88 {strides = array<i32>} : memref<4x2560xf32, #tpu.memory_space<vmem>>, vector<4x768xf32>,
    } else {
    }
    %c0 = arith.constant 0 : index
    %c0_19 = arith.constant 0 : index
    %c0_20 = arith.constant 0 : index
    %37 = vector.load %arg3[%c0, %c0_19, %c0_20] : memref<7x8x4xf32, #tpu.memory_space<vmem>>, vector<1x8x4xf32>
    %38 = vector.shape_cast %37 : vector<1x8x4xf32> to vector<8x4xf32>
    %c0_i32_21 = arith.constant 0 : i32
    %c0_i32_22 = arith.constant 0 : i32
    %39 = tpu.memref_slice %arg5[%9, %c0_i32_21, %c0_i32_22] : memref<2x4x2560xf32, #tpu.memory_space<vmem>> -> memref<1x4x2560xf32, #tpu.memory_space<vmem>>
    %40 = tpu.memref_squeeze %39 : memref<1x4x2560xf32, #tpu.memory_space<vmem>> -> memref<4x2560xf32, #tpu.memory_space<vmem>>
    %c0_23 = arith.constant 0 : index
    %c0_24 = arith.constant 0 : index
    %41 = vector.load %40[%c0_23, %c0_24] : memref<4x2560xf32, #tpu.memory_space<vmem>>, vector<4x1024xf32>
    %cst = arith.constant dense<0.000000e+00> : vector<8x1024xf32>
    %42 = tpu.matmul %38, %41, %cst {dimension_numbers = #tpu.dot_dimension_numbers<[1], [0], [0], [1], [0, 0, 1, 1], [], []>} : vector<8x4xf32>, vector<4x1024xf32>, vector<8x1024xf32> -> vector<8x1024xf32>
    %c0_i32_25 = arith.constant 0 : i32
    %c0_i32_26 = arith.constant 0 : i32
    %43 = tpu.memref_slice %arg5[%9, %c0_i32_25, %c0_i32_26] : memref<2x4x2560xf32, #tpu.memory_space<vmem>> -> memref<1x4x2560xf32, #tpu.memory_space<vmem>>
    %44 = tpu.memref_squeeze %43 : memref<1x4x2560xf32, #tpu.memory_space<vmem>> -> memref<4x2560xf32, #tpu.memory_space<vmem>>
    %c0_27 = arith.constant 0 : index
    %c256 = arith.constant 256 : index
    %45 = vector.load %44[%c0_27, %c256] : memref<4x2560xf32, #tpu.memory_space<vmem>>, vector<4x1024xf32>
    %c1 = arith.constant 1 : index
    %c0_28 = arith.constant 0 : index
    %c0_29 = arith.constant 0 : index
    %46 = vector.load %arg3[%c1, %c0_28, %c0_29] : memref<7x8x4xf32, #tpu.memory_space<vmem>>, vector<1x8x4xf32>
    %47 = vector.shape_cast %46 : vector<1x8x4xf32> to vector<8x4xf32>
    %cst_30 = arith.constant dense<0.000000e+00> : vector<8x1024xf32>
    %48 = tpu.matmul %47, %45, %cst_30 {dimension_numbers = #tpu.dot_dimension_numbers<[1], [0], [0], [1], [0, 0, 1, 1], [], []>} : vector<8x4xf32>, vector<4x1024xf32>, vector<8x1024xf32> -> vector<8x1024xf32>
    %49 = arith.addf %42, %48 : vector<8x1024xf32>
    %c0_i32_31 = arith.constant 0 : i32
    %c0_i32_32 = arith.constant 0 : i32
    %50 = tpu.memref_slice %arg5[%9, %c0_i32_31, %c0_i32_32] : memref<2x4x2560xf32, #tpu.memory_space<vmem>> -> memref<1x4x2560xf32, #tpu.memory_space<vmem>>
    %51 = tpu.memref_squeeze %50 : memref<1x4x2560xf32, #tpu.memory_space<vmem>> -> memref<4x2560xf32, #tpu.memory_space<vmem>>
    %c0_33 = arith.constant 0 : index
    %c512 = arith.constant 512 : index
    %52 = vector.load %51[%c0_33, %c512] : memref<4x2560xf32, #tpu.memory_space<vmem>>, vector<4x1024xf32>
    %c2 = arith.constant 2 : index
    %c0_34 = arith.constant 0 : index
    %c0_35 = arith.constant 0 : index
    %53 = vector.load %arg3[%c2, %c0_34, %c0_35] : memref<7x8x4xf32, #tpu.memory_space<vmem>>, vector<1x8x4xf32>
    %54 = vector.shape_cast %53 : vector<1x8x4xf32> to vector<8x4xf32>
    %cst_36 = arith.constant dense<0.000000e+00> : vector<8x1024xf32>
    %55 = tpu.matmul %54, %52, %cst_36 {dimension_numbers = #tpu.dot_dimension_numbers<[1], [0], [0], [1], [0, 0, 1, 1], [], []>} : vector<8x4xf32>, vector<4x1024xf32>, vector<8x1024xf32> -> vector<8x1024xf32>
    %56 = arith.addf %49, %55 : vector<8x1024xf32>
    %c0_i32_37 = arith.constant 0 : i32
    %c0_i32_38 = arith.constant 0 : i32
    %57 = tpu.memref_slice %arg5[%9, %c0_i32_37, %c0_i32_38] : memref<2x4x2560xf32, #tpu.memory_space<vmem>> -> memref<1x4x2560xf32, #tpu.memory_space<vmem>>
    %58 = tpu.memref_squeeze %57 : memref<1x4x2560xf32, #tpu.memory_space<vmem>> -> memref<4x2560xf32, #tpu.memory_space<vmem>>
    %c0_39 = arith.constant 0 : index
    %c768 = arith.constant 768 : index
    %59 = vector.load %58[%c0_39, %c768] : memref<4x2560xf32, #tpu.memory_space<vmem>>, vector<4x1024xf32>
    %c3 = arith.constant 3 : index
    %c0_40 = arith.constant 0 : index
    %c0_41 = arith.constant 0 : index
    %60 = vector.load %arg3[%c3, %c0_40, %c0_41] : memref<7x8x4xf32, #tpu.memory_space<vmem>>, vector<1x8x4xf32>
    %61 = vector.shape_cast %60 : vector<1x8x4xf32> to vector<8x4xf32>
    %cst_42 = arith.constant dense<0.000000e+00> : vector<8x1024xf32>
    %62 = tpu.matmul %61, %59, %cst_42 {dimension_numbers = #tpu.dot_dimension_numbers<[1], [0], [0], [1], [0, 0, 1, 1], [], []>} : vector<8x4xf32>, vector<4x1024xf32>, vector<8x1024xf32> -> vector<8x1024xf32>
    %63 = arith.addf %56, %62 : vector<8x1024xf32>
    %c0_i32_43 = arith.constant 0 : i32
    %c0_i32_44 = arith.constant 0 : i32
    %64 = tpu.memref_slice %arg5[%9, %c0_i32_43, %c0_i32_44] : memref<2x4x2560xf32, #tpu.memory_space<vmem>> -> memref<1x4x2560xf32, #tpu.memory_space<vmem>>
    %65 = tpu.memref_squeeze %64 : memref<1x4x2560xf32, #tpu.memory_space<vmem>> -> memref<4x2560xf32, #tpu.memory_space<vmem>>
    %c0_45 = arith.constant 0 : index
    %c1024 = arith.constant 1024 : index
    %66 = vector.load %65[%c0_45, %c1024] : memref<4x2560xf32, #tpu.memory_space<vmem>>, vector<4x1024xf32>
    %c4 = arith.constant 4 : index
    %c0_46 = arith.constant 0 : index
    %c0_47 = arith.constant 0 : index
    %67 = vector.load %arg3[%c4, %c0_46, %c0_47] : memref<7x8x4xf32, #tpu.memory_space<vmem>>, vector<1x8x4xf32>
    %68 = vector.shape_cast %67 : vector<1x8x4xf32> to vector<8x4xf32>
    %cst_48 = arith.constant dense<0.000000e+00> : vector<8x1024xf32>
    %69 = tpu.matmul %68, %66, %cst_48 {dimension_numbers = #tpu.dot_dimension_numbers<[1], [0], [0], [1], [0, 0, 1, 1], [], []>} : vector<8x4xf32>, vector<4x1024xf32>, vector<8x1024xf32> -> vector<8x1024xf32>
    %70 = arith.addf %63, %69 : vector<8x1024xf32>
    %c0_i32_49 = arith.constant 0 : i32
    %c0_i32_50 = arith.constant 0 : i32
    %71 = tpu.memref_slice %arg5[%9, %c0_i32_49, %c0_i32_50] : memref<2x4x2560xf32, #tpu.memory_space<vmem>> -> memref<1x4x2560xf32, #tpu.memory_space<vmem>>
    %72 = tpu.memref_squeeze %71 : memref<1x4x2560xf32, #tpu.memory_space<vmem>> -> memref<4x2560xf32, #tpu.memory_space<vmem>>
    %c0_51 = arith.constant 0 : index
    %c1280 = arith.constant 1280 : index
    %73 = vector.load %72[%c0_51, %c1280] : memref<4x2560xf32, #tpu.memory_space<vmem>>, vector<4x1024xf32>
    %c5 = arith.constant 5 : index
    %c0_52 = arith.constant 0 : index
    %c0_53 = arith.constant 0 : index
    %74 = vector.load %arg3[%c5, %c0_52, %c0_53] : memref<7x8x4xf32, #tpu.memory_space<vmem>>, vector<1x8x4xf32>
    %75 = vector.shape_cast %74 : vector<1x8x4xf32> to vector<8x4xf32>
    %cst_54 = arith.constant dense<0.000000e+00> : vector<8x1024xf32>
    %76 = tpu.matmul %75, %73, %cst_54 {dimension_numbers = #tpu.dot_dimension_numbers<[1], [0], [0], [1], [0, 0, 1, 1], [], []>} : vector<8x4xf32>, vector<4x1024xf32>, vector<8x1024xf32> -> vector<8x1024xf32>
    %77 = arith.addf %70, %76 : vector<8x1024xf32>
    %c0_i32_55 = arith.constant 0 : i32
    %c0_i32_56 = arith.constant 0 : i32
    %78 = tpu.memref_slice %arg5[%9, %c0_i32_55, %c0_i32_56] : memref<2x4x2560xf32, #tpu.memory_space<vmem>> -> memref<1x4x2560xf32, #tpu.memory_space<vmem>>
    %79 = tpu.memref_squeeze %78 : memref<1x4x2560xf32, #tpu.memory_space<vmem>> -> memref<4x2560xf32, #tpu.memory_space<vmem>>
    %c0_57 = arith.constant 0 : index
    %c1536 = arith.constant 1536 : index
    %80 = vector.load %79[%c0_57, %c1536] : memref<4x2560xf32, #tpu.memory_space<vmem>>, vector<4x1024xf32>
    %c6 = arith.constant 6 : index
    %c0_58 = arith.constant 0 : index
    %c0_59 = arith.constant 0 : index
    %81 = vector.load %arg3[%c6, %c0_58, %c0_59] : memref<7x8x4xf32, #tpu.memory_space<vmem>>, vector<1x8x4xf32>
    %82 = vector.shape_cast %81 : vector<1x8x4xf32> to vector<8x4xf32>
    %cst_60 = arith.constant dense<0.000000e+00> : vector<8x1024xf32>
    %83 = tpu.matmul %82, %80, %cst_60 {dimension_numbers = #tpu.dot_dimension_numbers<[1], [0], [0], [1], [0, 0, 1, 1], [], []>} : vector<8x4xf32>, vector<4x1024xf32>, vector<8x1024xf32> -> vector<8x1024xf32>
    %84 = arith.addf %77, %83 : vector<8x1024xf32>
    %c0_61 = arith.constant 0 : index
    %c0_62 = arith.constant 0 : index
    %c0_63 = arith.constant 0 : index
    %85 = vector.load %arg4[%c0_61, %c0_62, %c0_63] : memref<1x8x1024xf32, #tpu.memory_space<vmem>>, vector<1x8x1024xf32>
    %86 = vector.shape_cast %85 : vector<1x8x1024xf32> to vector<8x1024xf32>
    %87 = vector.shape_cast %84 : vector<8x1024xf32> to vector<1x8x1024xf32>
    tpu.vector_store %arg4[%c0_61, %c0_62, %c0_63], %87 {strides = array<i32>} : memref<1x8x1024xf32, #tpu.memory_space<vmem>>, vector<1x8x1024xf32>,
    return
  }
  func.func @transform_1(%arg0: i32, %arg1: i32) -> (i32, i32, i32) {
    %c0_i32 = arith.constant 0 : i32
    %c0_i32_0 = arith.constant 0 : i32
    %c0_i32_1 = arith.constant 0 : i32
    %c0_i32_2 = arith.constant 0 : i32
    return %c0_i32, %c0_i32_0, %c0_i32_1 : i32, i32, i32
  }
  func.func @transform_2(%arg0: i32, %arg1: i32) -> (i32, i32, i32) {
    %c0_i32 = arith.constant 0 : i32
    %c0_i32_0 = arith.constant 0 : i32
    return %arg0, %c0_i32, %arg1 : i32, i32, i32
  }
}

</mosaic_0001>

<bundles_post_ra>
// kernel: tpu_custom_call.1
= control target key start
LH: loop header
LB: loop body
LE: loop exit
PB: predicated region body
PF: predicated region fallthrough
CT: control target
= control target key end

     0   :  { %7 = vsyncpa [#allocation5], 0  ;;  %s3151_s0 = inlined_call_operand.hbm [shape: f32[2,4,2048], index: 0, kind: input, shape index: {}]   ;;  %s3152_s1 = inlined_call_operand.vmem [shape: f32[7,8,4], index: 1, kind: input, shape index: {}]   ;;  %s3153_s2 = inlined_call_operand.hbm [shape: f32[2,8,2048], index: 2, kind: output, shape index: {}]  }
   0x1   :  { %9 = vsyncpa [#allocation5 + $0x1], 0  ;;  %s2591_s9 = smov 0   ;;  %s2593_s10 = smov 0  }
   0x2   :  { %s2595_s11 = smov 0   ;;  %s2597_s12 = smov 0  }
   0x3   :  { %s2599_s13 = smov 0   ;;  %s2601_s14 = smov 0  }
   0x4   :  { %s2603_s15 = smov 0   ;;  %s2605_s16 = smov 0  }
   0x5 LB: > { %3171 = sst [smem:[#allocation24_spill]] %s2543_s9  ;;  %s2000_s17 = sadd.s32 4294967295, %s2571_s16   ;;  %s2571_s16 = sphi %s2605_s16, %s15_s16   ;;  %s2567_s15 = sphi %s2603_s15, %s3211_s15   ;;  %s2563_s14 = sphi %s2601_s14, %s3210_s14   ;;  %s2559_s13 = sphi %s2599_s13, %s3214_s13   ;;  %s2555_s12 = sphi %s2597_s12, %s3208_s12   ;;  %s2551_s11 = sphi %s2595_s11, %s3207_s11   ;;  %s2547_s10 = sphi %s2593_s10, %s3213_s10   ;;  %s2543_s9 = sphi %s2591_s9, %s3212_s9  }
   0x6   : > { %3172 = sst [smem:[#allocation25_spill]] %s2551_s11  ;;  %s2001_s18 = sadd.s32 4294967294, %s2571_s16  }
   0x7   : > { %3173 = sst [smem:[#allocation26_spill]] %s2563_s14  ;;  %s24_s19 = sadd.s32 1, %s2563_s14 }
   0x8   : > { %3174 = sst [smem:[#allocation27_spill]] %s2567_s15  ;;  %p25_p0 = scmp.ge.s32.totalorder %s24_s19, 2 }
   0x9   : > { %3175 = sst [smem:[#allocation28_spill]] %s2571_s16  ;;  %s27_s20 = sadd.s32 1, %s2567_s15 }
   0xa   : > { %p67_p1 = scmp.ne.s32.totalorder %s2551_s11, %s2547_s10  ;;  %p68_p2 = scmp.eq.s32.totalorder %s2000_s17, 3 }
   0xb   : > { %s3216_s19 = smov (%p25_p0, %s24_s19), 0  ;;  %s3218_s20 = smov (!%p25_p0, %s27_s20), %s2567_s15 }
   0xc   : > { %3176 = sst [smem:[#allocation29_spill]] %s3216_s19  ;;  %s53_s21 = ssub.s32 %s2563_s14, %s3216_s19 }
   0xd   : > { %p2642_p3 = por %p68_p2, %p67_p1  ;;  %p29_p4 = scmp.ge.s32.totalorder %s3218_s20, 2 }
   0xe   : > { %p73_p5 = scmp.ne.s32.totalorder %s2547_s10, %s2543_s9  ;;  %p74_p6 = scmp.eq.s32.totalorder %s2001_s18, 3 }
   0xf   : > { %s3177_s22 = scalar_select %p2642_p3, 1, 0 }
  0x10   : > { %p2003_p7 = scmp.ge.s32.totalorder %s2571_s16, 1  ;;  %s3220_s20 = smov (%p29_p4, %s3218_s20), 0 }
  0x11   : > { %3178 = sst [smem:[#allocation30_spill]] %s3177_s22  ;;  %p2651_p8 = por %p74_p6, %p73_p5 }
  0x12   : > { %3179 = sst [smem:[#allocation31_spill]] %s3220_s20  ;;  %p95_p9 = scmp.lt.s32.totalorder %s2571_s16, 5 }
  0x13   : > { %s3180_s23 = scalar_select %p2651_p8, 1, 0 }
  0x14   : > { %s52_s24 = ssub.s32 %s2567_s15, %s3220_s20  ;;  %s57_s25 = sadd.s32 1, %s2551_s11 }
  0x15   : > { %3181 = sst [smem:[#allocation32_spill]] %s3180_s23  ;;  %s54_s26 = sor.u32 %s53_s21, %s52_s24 }
  0x16   : > { %p96_p10 = pnand %p2003_p7, %p95_p9  ;;  %p55_p11 = scmp.eq.s32.totalorder %s54_s26, 0 }
  0x17   : > { %s3154_s28 = sand.u32 (!%p96_p10), 1, %s2547_s10   ;;  %p111_p12 = scmp.lt.s32.totalorder (!%p96_p10), %s2555_s12, 0 }
  0x18   : > { %s2660_s27 = scalar_select %p55_p11, %s2551_s11, %s57_s25  }
  0x19   : > { %99 = sbr.rel (%p96_p10) target bundleno = 485 (0x1e5), region = 24  ;;  %s2666_s29 = sshll.u32 (!%p96_p10), %s3154_s28, 6 }
  0x1a   : > { %3182 = sst [smem:[#allocation33_spill]] %s2660_s27  ;;  %s112_s30 = ssub.s32 (!%p96_p10), 0, %s2555_s12 }
  0x1b   : > { %s2005_s3 = smin.u32 (!%p96_p10), %s2555_s12, %s112_s30  ;;  %p3159_p0 = scmp.eq.s32.totalorder (!%p96_p10), %s2555_s12, 0 }
  0x1c   : > { %s114_s4 = sand.u32 (!%p96_p10), 1, %s2005_s3   ;;  %s2673_s6 = sshll.u32 (!%p96_p10), %s2555_s12, 10 }
  0x1d   : > { %s115_s5 = ssub.s32 (!%p96_p10), 0, %s114_s4  ;;  %s2676_s7 = sshll.u32 (!%p96_p10), %s2559_s13, 4 }
  0x1e   : > { %s3222_s5 = smov (!%p111_p12, %s115_s5), %s114_s4  ;;  %s128_s17 = sshra.s32 %s2673_s6, 7 }
  0x1f   : > { %p2007_p1 = scmp.lt.s32.totalorder %s3222_s5, 0  ;;  %s121_s8 = sadd.s32 2, %s3222_s5 }
  0x20   : > { %s131_s18 = sadd.s32 %s2676_s7, %s128_s17  ;;  %s2014_s17 = sadd.s32 4294966528, %s2673_s6 }
  0x21   : > { %s3224_s8 = smov (!%p2007_p1, %s121_s8), %s3222_s5  ;;  %s2011_s21 = sshll.u32 %s131_s18, 2 }
  0x22   : > { %s2012_s24 = smul.u32 80, %s3224_s8  ;;  %s133_s30 = scalar_lea.hbm %s3151_s0, %s2011_s21 }
  0x23   : > { %s146_s3 = sshll.u32 %s133_s30, 4  ;;  %s2696_s18 = sshra.s32 %s2014_s17, 7  ;;  %s2690_s3 = int_to_ptr.hbm [resolvable:$true] %s146_s3 }
  0x24   : > { %s2687_s13 = scalar_lea.vmem [#allocation2], %s2012_s24  ;;  %s2699_s28 = scalar_lea.sflag [#allocation3], %s3224_s8 }
  0x25   : > { %s1905_s4 = scalar_lea.vmem %s2687_s13, 24 [#allocation2]  ;;  %s2291_s20 = sshra.s32 %s2690_s3, 4  ;;  %s2292_s20 = int_to_ptr.hbm [resolvable:$true] %s2291_s20 }
  0x26   : > { %s2692_s5 = sshll.u32 %s1905_s4, 4  ;;  %s2293_s21 = scalar_lea.hbm %s2292_s20, 32  ;;  %s149_s5 = int_to_ptr.vmem [resolvable:$true] %s2692_s5 }
  0x27   : > { %p2294_p4 = scmp.ne.s32.totalorder %s2292_s20, %s2293_s21  ;;  %s2707_s26 = scalar_lea.hbm %s3151_s0, 128 }
  0x28   : > { %p2298_p7 = scmp.lt.s32.totalorder %s2292_s20, %s3151_s0  ;;  %p2299_p9 = scmp.lt.s32.totalorder %s2707_s26, %s2293_s21 }
  0x29   : > { %p2295_p5 = pnand %p2294_p4, %p3159_p0 }
  0x2a   : > { %p2300_p10 = por %p2299_p9, %p2298_p7 }
  0x2b   : > { %p2296_p6 = pneg %p2295_p5 }
  0x2d   : > { %p2301_p11 = pnand %p2300_p10, %p2296_p6 }
  0x2f   : > { %2304 = shalt.err (!%p2301_p11)  }
  0x30   : > { %s2305_s17 = sshra.s32 %s149_s5, 4  ;;  %s2573_s24 = smov [#allocation2]   ;;  %s2306_s17 = int_to_ptr.vmem [resolvable:$true] %s2305_s17 }
  0x31   : > { %s2307_s19 = scalar_lea.vmem %s2306_s17, 32  ;;  %s2717_s25 = scalar_lea.vmem %s2573_s24, 160 }
  0x32   : > { %p2308_p12 = scmp.ne.s32.totalorder %s2306_s17, %s2307_s19  ;;  %p2312_p5 = scmp.lt.s32.totalorder %s2306_s17, [#allocation2] }
  0x33   : > { %p2313_p13 = scmp.lt.s32.totalorder %s2717_s25, %s2307_s19 }
  0x34   : > { %p2309_p1 = pnand %p2308_p12, %p3159_p0 }
  0x35   : > { %p2314_p2 = por %p2313_p13, %p2312_p5 }
  0x36   : > { %p2310_p4 = pneg %p2309_p1 }
  0x38   : > { %p2315_p7 = pnand %p2314_p2, %p2310_p4 }
  0x3a   : > { %2318 = shalt.err (!%p2315_p7)  }
  0x3b   : > { %2197 = dma.hbm_to_vmem [thread:$0]  (%p3159_p0), %s2690_s3, 512, %s149_s5, %s2699_s28 }
  0x3c   : > { %s159_s20 = sadd.s32 %s2676_s7, %s2696_s18  ;;  %s2729_s21 = scalar_lea.sflag %s2699_s28, 2 [#allocation3] }
  0x3d   : > { %s2015_s19 = sshll.u32 %s159_s20, 2  ;;  %s175_s30 = sshll.u32 %s2687_s13, 4  ;;  %s2735_s30 = int_to_ptr.vmem [resolvable:$true] %s175_s30 }
  0x3e   : > { %s161_s24 = scalar_lea.hbm %s3151_s0, %s2015_s19  ;;  %p3183_p13 = scmp.gt.s32.totalorder %s2555_s12, 0 }
  0x3f   : > { %s2737_s15 = sshll.u32 %s161_s24, 4  ;;  %s174_s15 = int_to_ptr.hbm [resolvable:$true] %s2737_s15 }
  0x40   : > { %p2743_p2 = pnand %p3183_p13, %p3159_p0  ;;  %s2319_s3 = sshra.s32 %s174_s15, 4  ;;  %s2320_s3 = int_to_ptr.hbm [resolvable:$true] %s2319_s3 }
  0x41   : > { %s2321_s5 = scalar_lea.hbm %s2320_s3, 24  ;;  %p2327_p1 = scmp.lt.s32.totalorder %s2320_s3, %s3151_s0 }
  0x42   : > { %p2322_p9 = scmp.ne.s32.totalorder %s2320_s3, %s2321_s5  ;;  %p2323_p10 = pneg %p2743_p2 }
  0x43   : > { %p2328_p4 = scmp.lt.s32.totalorder %s2707_s26, %s2321_s5 }
  0x44   : > { %p2324_p11 = pnand %p2323_p10, %p2322_p9 }
  0x45   : > { %p2329_p5 = por %p2328_p4, %p2327_p1 }
  0x46   : > { %p2325_p12 = pneg %p2324_p11 }
  0x48   : > { %p2330_p7 = pnand %p2329_p5, %p2325_p12 }
  0x4a   : > { %2333 = shalt.err (!%p2330_p7)  }
  0x4b   : > { %s2334_s19 = sshra.s32 %s2735_s30, 4  ;;  %s2335_s19 = int_to_ptr.vmem [resolvable:$true] %s2334_s19 }
  0x4c   : > { %s2336_s4 = scalar_lea.vmem %s2335_s19, 24  ;;  %p2342_p8 = scmp.lt.s32.totalorder %s2335_s19, [#allocation2] }
  0x4d   : > { %p2337_p13 = scmp.ne.s32.totalorder %s2335_s19, %s2336_s4  ;;  %p2343_p3 = scmp.lt.s32.totalorder %s2717_s25, %s2336_s4 }
  0x4f   : > { %p2339_p6 = pnand %p2337_p13, %p2323_p10  ;;  %p2344_p9 = por %p2343_p3, %p2342_p8 }
  0x51   : > { %p2340_p0 = pneg %p2339_p6 }
  0x53   : > { %p2345_p11 = pnand %p2344_p9, %p2340_p0 }
  0x55   : > { %2348 = shalt.err (!%p2345_p11)  }
  0x56   : > { %2200 = dma.hbm_to_vmem [thread:$0]  (!%p2743_p2), %s174_s15, 384, %s2735_s30, %s2729_s21 }
  0x57   : > { %s3161_s17 = sadd.s32 1024, %s2673_s6  ;;  %s1922_s24 = scalar_lea.vmem %s2687_s13, 56 [#allocation2] }
  0x58   : > { %s185_s3 = sshra.s32 %s3161_s17, 7  ;;  %s2766_s5 = scalar_lea.sflag %s2699_s28, 4 [#allocation3] }
  0x59   : > { %s187_s18 = sadd.s32 %s2676_s7, %s185_s3  ;;  %s2769_s20 = sshll.u32 %s1922_s24, 4  ;;  %s205_s20 = int_to_ptr.vmem [resolvable:$true] %s2769_s20 }
  0x5a   : > { %s2019_s14 = sshll.u32 %s187_s18, 2  ;;  %p3185_p3 = scmp.eq.s32.totalorder %s2555_s12, 0 }
  0x5b   : > { %s189_s27 = scalar_lea.hbm %s3151_s0, %s2019_s14  ;;  %p3186_p8 = scmp.lt.s32.totalorder %s2555_s12, 1 }
  0x5c   : > { %s202_s30 = sshll.u32 %s189_s27, 4  ;;  %s2784_s17 = sadd.s32 1, %s2555_s12  ;;  %s2786_s30 = int_to_ptr.hbm [resolvable:$true] %s202_s30 }
  0x5d   : > { %p2779_p0 = pnand %p3186_p8, %p3185_p3  ;;  %s2349_s24 = sshra.s32 %s2786_s30, 4  ;;  %s2789_s24 = int_to_ptr.hbm [resolvable:$true] %s2349_s24 }
  0x5e   : > { %s2351_s3 = scalar_lea.hbm %s2789_s24, 24  ;;  %p2357_p1 = scmp.lt.s32.totalorder %s2789_s24, %s3151_s0 }
  0x5f   : > { %p2352_p2 = scmp.ne.s32.totalorder %s2789_s24, %s2351_s3  ;;  %p2353_p6 = pneg %p2779_p0 }
  0x60   : > { %p2358_p4 = scmp.lt.s32.totalorder %s2707_s26, %s2351_s3 }
  0x61   : > { %p2354_p10 = pnand %p2353_p6, %p2352_p2 }
  0x62   : > { %p2359_p5 = por %p2358_p4, %p2357_p1 }
  0x63   : > { %p2355_p12 = pneg %p2354_p10 }
  0x65   : > { %p2360_p7 = pnand %p2359_p5, %p2355_p12 }
  0x67   : > { %2363 = shalt.err (!%p2360_p7)  }
  0x68   : > { %s2364_s4 = sshra.s32 %s205_s20, 4  ;;  %s2365_s4 = int_to_ptr.vmem [resolvable:$true] %s2364_s4 }
  0x69   : > { %s2366_s11 = scalar_lea.vmem %s2365_s4, 24  ;;  %p2372_p3 = scmp.lt.s32.totalorder %s2365_s4, [#allocation2] }
  0x6a   : > { %p2367_p13 = scmp.ne.s32.totalorder %s2365_s4, %s2366_s11  ;;  %p2373_p8 = scmp.lt.s32.totalorder %s2717_s25, %s2366_s11 }
  0x6c   : > { %p2369_p9 = pnand %p2367_p13, %p2353_p6  ;;  %p2374_p2 = por %p2373_p8, %p2372_p3 }
  0x6e   : > { %p2370_p11 = pneg %p2369_p9 }
  0x70   : > { %p2375_p10 = pnand %p2374_p2, %p2370_p11 }
  0x72   : > { %2378 = shalt.err (!%p2375_p10)  }
  0x73   : > { %2203 = dma.hbm_to_vmem [thread:$0]  (!%p2779_p0), %s2786_s30, 384, %s205_s20, %s2766_s5 }
  0x74   : > { %p3169_p6 = scmp.lt.s32.totalorder %s2784_s17, 2  ;;  %s213_s11 = ssub.s32 1, %s3224_s8 }
  0x75   : > { %s2025_s3 = smul.u32 80, %s213_s11  ;;  %p2220_p12 = scmp.gt.s32.totalorder %s2784_s17, 0 }
  0x76   : > { %s3188_s15 = sadd.s32 1024, %s2673_s6  ;;  %s2823_s16 = scalar_lea.sflag [#allocation3], %s213_s11 }
  0x77   : > { %s2027_s18 = sadd.s32 4294966528, %s3188_s15  ;;  %s2819_s27 = scalar_lea.vmem [#allocation2], %s2025_s3 }
  0x78   : > { %s1932_s14 = scalar_lea.vmem %s2819_s27, 24 [#allocation2]  ;;  %s244_s19 = sshra.s32 %s2027_s18, 7 }
  0x79   : > { %s235_s4 = sshll.u32 %s1932_s14, 4  ;;  %s246_s23 = sadd.s32 %s2676_s7, %s244_s19  ;;  %s236_s4 = int_to_ptr.vmem [resolvable:$true] %s235_s4 }
  0x7a   : > { %s2028_s9 = sshll.u32 %s246_s23, 2  ;;  %s2381_s20 = scalar_lea.hbm %s2789_s24, 32 }
  0x7b   : > { %p2382_p0 = scmp.ne.s32.totalorder %s2789_s24, %s2381_s20  ;;  %p2387_p7 = scmp.lt.s32.totalorder %s2707_s26, %s2381_s20 }
  0x7d   : > { %p2383_p4 = pnand %p2382_p0, %p3169_p6  ;;  %p2388_p13 = por %p2387_p7, %p2357_p1 }
  0x7f   : > { %p2384_p5 = pneg %p2383_p4 }
  0x81   : > { %p2389_p9 = pnand %p2388_p13, %p2384_p5 }
  0x83   : > { %2392 = shalt.err (!%p2389_p9)  }
  0x84   : > { %s2393_s3 = sshra.s32 %s236_s4, 4  ;;  %s2394_s3 = int_to_ptr.vmem [resolvable:$true] %s2393_s3 }
  0x85   : > { %s2395_s23 = scalar_lea.vmem %s2394_s3, 32  ;;  %p2400_p2 = scmp.lt.s32.totalorder %s2394_s3, [#allocation2] }
  0x86   : > { %p2396_p11 = scmp.ne.s32.totalorder %s2394_s3, %s2395_s23  ;;  %p2401_p10 = scmp.lt.s32.totalorder %s2717_s25, %s2395_s23 }
  0x88   : > { %p2397_p3 = pnand %p2396_p11, %p3169_p6  ;;  %p2402_p0 = por %p2401_p10, %p2400_p2 }
  0x8a   : > { %p2398_p8 = pneg %p2397_p3 }
  0x8c   : > { %p2403_p4 = pnand %p2402_p0, %p2398_p8 }
  0x8e   : > { %2406 = shalt.err (!%p2403_p4)  }
  0x8f   : > { %2205 = dma.hbm_to_vmem [thread:$0]  (%p3169_p6), %s2786_s30, 512, %s236_s4, %s2823_s16 }
  0x90   : > { %s248_s11 = scalar_lea.hbm %s3151_s0, %s2028_s9  ;;  %s1941_s15 = scalar_lea.sflag %s2823_s16, 2 [#allocation3] }
  0x91   : > { %s260_s18 = sshll.u32 %s248_s11, 4  ;;  %s262_s14 = sshll.u32 %s2819_s27, 4  ;;  %s2847_s18 = int_to_ptr.hbm [resolvable:$true] %s260_s18  ;;  %s2849_s14 = int_to_ptr.vmem [resolvable:$true] %s262_s14 }
  0x92   : > { %p2855_p1 = pnand %p2220_p12, %p3169_p6  ;;  %s2178_s30 = sadd.s32 2048, %s2673_s6 }
  0x93   : > { %s1949_s4 = scalar_lea.vmem %s2819_s27, 56 [#allocation2]  ;;  %s272_s9 = sshra.s32 %s2178_s30, 7 }
  0x94   : > { %s2407_s20 = sshra.s32 %s2847_s18, 4  ;;  %p2411_p13 = pneg %p2855_p1  ;;  %s2408_s20 = int_to_ptr.hbm [resolvable:$true] %s2407_s20 }
  0x95   : > { %s2409_s8 = scalar_lea.hbm %s2408_s20, 24  ;;  %p2415_p12 = scmp.lt.s32.totalorder %s2408_s20, %s3151_s0 }
  0x96   : > { %p2410_p7 = scmp.ne.s32.totalorder %s2408_s20, %s2409_s8  ;;  %p2416_p3 = scmp.lt.s32.totalorder %s2707_s26, %s2409_s8 }
  0x98   : > { %p2412_p9 = pnand %p2411_p13, %p2410_p7  ;;  %p2417_p8 = por %p2416_p3, %p2415_p12 }
  0x9a   : > { %p2413_p11 = pneg %p2412_p9 }
  0x9c   : > { %p2418_p2 = pnand %p2417_p8, %p2413_p11 }
  0x9e   : > { %2421 = shalt.err (!%p2418_p2)  }
  0x9f   : > { %s2422_s6 = sshra.s32 %s2849_s14, 4  ;;  %s2423_s6 = int_to_ptr.vmem [resolvable:$true] %s2422_s6 }
  0xa0   : > { %s2424_s27 = scalar_lea.vmem %s2423_s6, 24  ;;  %p2430_p5 = scmp.lt.s32.totalorder %s2423_s6, [#allocation2] }
  0xa1   : > { %p2425_p10 = scmp.ne.s32.totalorder %s2423_s6, %s2424_s27  ;;  %p2431_p6 = scmp.lt.s32.totalorder %s2717_s25, %s2424_s27 }
  0xa3   : > { %p2427_p0 = pnand %p2425_p10, %p2411_p13  ;;  %p2432_p7 = por %p2431_p6, %p2430_p5 }
  0xa5   : > { %p2428_p4 = pneg %p2427_p0 }
  0xa7   : > { %p2433_p9 = pnand %p2432_p7, %p2428_p4 }
  0xa9   : > { %2436 = shalt.err (!%p2433_p9)  }
  0xaa   : > { %2208 = dma.hbm_to_vmem [thread:$0]  (!%p2855_p1), %s2847_s18, 384, %s2849_s14, %s1941_s15 }
  0xab   : > { %s274_s22 = sadd.s32 %s2676_s7, %s272_s9  ;;  %s1951_s24 = scalar_lea.sflag %s2823_s16, 4 [#allocation3] }
  0xac   : > { %s2032_s11 = sshll.u32 %s274_s22, 2  ;;  %s2879_s30 = sshll.u32 %s1949_s4, 4  ;;  %s292_s30 = int_to_ptr.vmem [resolvable:$true] %s2879_s30 }
  0xad   : > { %s276_s19 = scalar_lea.hbm %s3151_s0, %s2032_s11  ;;  %p3190_p6 = scmp.lt.s32.totalorder %s2784_s17, 2 }
  0xae   : > { %s289_s3 = sshll.u32 %s276_s19, 4  ;;  %p3191_p5 = scmp.lt.s32.totalorder %s2784_s17, 1  ;;  %s290_s3 = int_to_ptr.hbm [resolvable:$true] %s289_s3 }
  0xaf   : > { %s2437_s15 = sshra.s32 %s290_s3, 4  ;;  %s2438_s15 = int_to_ptr.hbm [resolvable:$true] %s2437_s15 }
  0xb0   : > { %p2889_p13 = pnand %p3191_p5, %p3190_p6  ;;  %s2439_s18 = scalar_lea.hbm %s2438_s15, 24 }
  0xb1   : > { %p2440_p1 = scmp.ne.s32.totalorder %s2438_s15, %s2439_s18  ;;  %p2445_p8 = scmp.lt.s32.totalorder %s2438_s15, %s3151_s0 }
  0xb2   : > { %s3192_s23 = scalar_select %p2889_p13, 1, 0 }
  0xb3   : > { %p2441_p11 = pneg %p2889_p13  ;;  %p2446_p2 = scmp.lt.s32.totalorder %s2707_s26, %s2439_s18 }
  0xb5   : > { %p2442_p12 = pnand %p2441_p11, %p2440_p1  ;;  %p2447_p10 = por %p2446_p2, %p2445_p8 }
  0xb7   : > { %p2443_p3 = pneg %p2442_p12 }
  0xb9   : > { %p2448_p0 = pnand %p2447_p10, %p2443_p3 }
  0xbb   : > { %2451 = shalt.err (!%p2448_p0)  }
  0xbc   : > { %s2452_s17 = sshra.s32 %s292_s30, 4  ;;  %s2453_s17 = int_to_ptr.vmem [resolvable:$true] %s2452_s17 }
  0xbd   : > { %s2454_s9 = scalar_lea.vmem %s2453_s17, 24  ;;  %p2460_p6 = scmp.lt.s32.totalorder %s2453_s17, [#allocation2] }
  0xbe   : > { %p2455_p4 = scmp.ne.s32.totalorder %s2453_s17, %s2454_s9  ;;  %p2461_p5 = scmp.lt.s32.totalorder %s2717_s25, %s2454_s9 }
  0xc0   : > { %p2457_p7 = pnand %p2455_p4, %p2441_p11  ;;  %p2462_p13 = por %p2461_p5, %p2460_p6 }
  0xc2   : > { %p2458_p9 = pneg %p2457_p7 }
  0xc4   : > { %p2463_p1 = pnand %p2462_p13, %p2458_p9 }
  0xc6   : > { %2466 = shalt.err (!%p2463_p1)  }
  0xc7   : > { %p3193_p12 = scmp.ne.s32.totalorder %s3192_s23, 0  ;;  %s2905_s26 = scalar_lea.vmem [#allocation4], %s2666_s29 }
  0xc9   : > { %2211 = dma.hbm_to_vmem [thread:$0]  (!%p3193_p12), %s290_s3, 384, %s292_s30, %s1951_s24 }
  0xca   : > { %2527 = dma.done.wait %s2699_s28, 512 }
  0xcb   : > { %2528 = vsyncadd %s2699_s28, 4294966784  ;;  %p3194_p11 = scmp.gt.s32.totalorder %s2555_s12, 0 }
  0xcd   : > { %2530 = dma.done.wait (%p3194_p11), %s2729_s21, 384  ;;  %p3195_p3 = pmov %p3194_p11 }
  0xce   : > { %p3196_p13 = scmp.lt.s32.totalorder %s2555_s12, 1 }
  0xcf   : > { %2532 = vsyncadd (%p3195_p3), %s2729_s21, 4294966912 }
  0xd0   : > { %2534 = dma.done.wait (%p3196_p13), %s2766_s5, 384  ;;  %p3197_p8 = pmov %p3196_p13 }
  0xd1   : > { %p3198_p2 = scmp.ne.s32.totalorder %s2555_s12, 0 }
  0xd2   : > { %2536 = vsyncadd (%p3197_p8), %s2766_s5, 4294966912 }
  0xd3   : > { %323 = sbr.rel (%p3198_p2) target bundleno = 220 (0xdc), region = 84 }
  0xd8   : > { %v2574_v0 = vmov 0.0  }
  0xd9   : > { %327 = vst [vmem:[%s2687_s13] sm:$0xff] %v2574_v0 }
  0xda   : > { %328 = vst [vmem:[%s2687_s13 + $0x8] sm:$0xff] %v2574_v0 }
  0xdb   : > { %329 = vst [vmem:[%s2687_s13 + $0x10] sm:$0xff] %v2574_v0 }
  0xdc PF: > { %p2038_p10 = scmp.ne.s32.totalorder %s2555_s12, 1 }
  0xde   : > { %333 = sbr.rel (%p2038_p10) target bundleno = 231 (0xe7), region = 88 }
  0xe3   : > { %v2575_v1 = vmov 0.0  }
  0xe4   : > { %337 = vst [vmem:[%s2687_s13 + $0x38] sm:$0xff] %v2575_v1 }
  0xe5   : > { %338 = vst [vmem:[%s2687_s13 + $0x40] sm:$0xff] %v2575_v1 }
  0xe6   : > { %339 = vst [vmem:[%s2687_s13 + $0x48] sm:$0xff] %v2575_v1 }
  0xe7 PF: > { %v345_v2 = vld [vmem:[%s2687_s13 + $0x8] sm:$0xff]  ;;  %v346_v3 = vld [vmem:[%s2687_s13 + $0x10] sm:$0xff]  ;;  %v2933_v4 = vld [vmem:[%s2687_s13 + $0x20] sm:$0xff]  ;;  %vm374_vm0 = vcmask 1043456   ;;  %vm370_vm1 = vcmask 31744   ;;  %s2160_s8 = sshll.u32 %s2555_s12, 3 }
  0xe8   : > { %355 = vst [vmem:[#allocation1] ss:$2 sm:$0xff] %v345_v2  ;;  %v347_v5 = vld [vmem:[%s2687_s13 + $0x18] sm:$0xff]  ;;  %v344_v6 = vld [vmem:[%s2687_s13] sm:$0xff]  ;;  %v2956_v18 = vld [vmem:[%s2687_s13 + $0x28] sm:$0xff]  ;;  %s1826_s19 = sadd.s32 %s2160_s8, %s2676_s7  ;;  %s3199_s15 = sld [smem:[#allocation30_spill]] }
  0xe9   : > { %357 = vst [vmem:[#allocation1 + $0x10] ss:$2 sm:$0xff] %v346_v3  ;;  %v2041_v7 = vld [vmem:[%s3152_s1 + $0x8] sm:$0xff]  ;;  %v340_v25 = vld [vmem:[%s3152_s1] sm:$0xff]  ;;  %v2074_v44 = vld [vmem:[%s3152_s1 + $0x10] sm:$0xff]  ;;  %s2162_s12 = sshll.u32 %s1826_s19, 3 }
  0xea   : > { %361 = vst [vmem:[#allocation1 + $0x30] ss:$2 sm:$0xff] %v2933_v4  ;;  %v2974_v28 = vld [vmem:[%s2687_s13 + $0x30] sm:$0xff]  ;;  %v2108_v61 = vld [vmem:[%s3152_s1 + $0x20] sm:$0xff]  ;;  %s1828_s23 = scalar_lea.hbm %s3153_s2, %s2162_s12  ;;  %s1830_s18 = sshll.u32 %s2905_s26, 4  ;;  %s1831_s18 = int_to_ptr.vmem [resolvable:$true] %s1830_s18 }
  0xeb   : > { %359 = vst [vmem:[#allocation1 + $0x20] ss:$2 sm:$0xff] %v347_v5  ;;  %v1173_v37 = vld [vmem:[%s2687_s13 + $0x38] sm:$0xff]  ;;  %v2091_v55 = vld [vmem:[%s3152_s1 + $0x18] sm:$0xff]  ;;  %v2125_v1 = vld [vmem:[%s3152_s1 + $0x28] sm:$0xff]  ;;  %s1832_s14 = sshll.u32 %s1828_s23, 4  ;;  %s1833_s14 = int_to_ptr.hbm [resolvable:$true] %s1832_s14 }
  0xec   : > { %v1385_v58 = vld [vmem:[%s2687_s13 + $0x40] sm:$0xff]  ;;  %s3200_s4 = sand.u32 1, %s2547_s10   ;;  %s2481_s9 = sshra.s32 %s1833_s14, 4  ;;  %s2482_s9 = int_to_ptr.hbm [resolvable:$true] %s2481_s9 }
  0xed   : > { %v1597_v0 = vld [vmem:[%s2687_s13 + $0x48] sm:$0xff]  ;;  %s1815_s17 = scalar_lea.sflag [#allocation5], %s3200_s4  ;;  %s2483_s16 = scalar_lea.hbm %s2482_s9, 64 }
  0xee   : > { %p2484_p0 = scmp.ne.s32.totalorder %s2482_s9, %s2483_s16  ;;  %p3201_p4 = scmp.ne.s32.totalorder %s3199_s15, 0 }
  0xef   : > { %v362_v8 = vld.sshfl [vmem:[#allocation1] sm:$0xff pattern:$0x75316420]  ;;  %v363_v9 = vld.sshfl [vmem:[#allocation1 + $0x8] sm:$0xff pattern:$0x75316420]  ;;  %p2488_p6 = scmp.lt.s32.totalorder %s2482_s9, %s3153_s2 }
  0xf0   : > { %2042 = vmatpush.msk.msra.mxu0 %vm374_vm0, %v362_v8  ;;  %2044 = vmatpush.msk.msra.mxu1 %vm374_vm0, %v363_v9  ;;  %552 = vst [vmem:[#allocation1] ss:$2 sm:$0xff] %v344_v6  ;;  %v364_v10 = vld.sshfl [vmem:[#allocation1 + $0x10] sm:$0xff pattern:$0x75316420]  ;;  %p2485_p7 = pnand %p2484_p0, %p3201_p4  ;;  %s2487_s25 = scalar_lea.hbm %s3153_s2, 256 }
  0xf1   : > { %2046 = vmatpush.msk.msra.mxu2 %vm374_vm0, %v364_v10  ;;  %v365_v11 = vld.sshfl [vmem:[#allocation1 + $0x18] sm:$0xff pattern:$0x75316420]  ;;  %2043 = vmatmul.msk.f32.vlgmr.msra.gmra.mxu0 %vm370_vm1, %v2041_v7  ;;  %v368_v12 = vld.sshfl [vmem:[#allocation1 + $0x30] sm:$0xff pattern:$0x75316420]  ;;  %p2489_p5 = scmp.lt.s32.totalorder %s2487_s25, %s2483_s16 }
  0xf2   : > { %2048 = vmatpush.msk.msra.mxu3 %vm374_vm0, %v365_v11  ;;  %554 = vst [vmem:[#allocation1 + $0x10] ss:$2 sm:$0xff] %v345_v2  ;;  %2045 = vmatmul.msk.f32.vlgmr.msra.gmra.mxu1 %vm370_vm1, %v2041_v7  ;;  %v369_v13 = vld.sshfl [vmem:[#allocation1 + $0x38] sm:$0xff pattern:$0x75316420]  ;;  %v2142_v10 = vld [vmem:[%s3152_s1 + $0x30] sm:$0xff]  ;;  %p2486_p9 = pneg %p2485_p7 }
  0xf3   : > { %2047 = vmatmul.msk.f32.vlgmr.msra.gmra.mxu2 %vm370_vm1, %v2041_v7  ;;  %2049 = vmatmul.msk.f32.vlgmr.msra.gmra.mxu3 %vm370_vm1, %v2041_v7  ;;  %558 = vst [vmem:[#allocation1 + $0x30] ss:$2 sm:$0xff] %v347_v5  ;;  %v366_v14 = vld.sshfl [vmem:[#allocation1 + $0x20] sm:$0xff pattern:$0x75316420]  ;;  %p2490_p1 = por %p2489_p5, %p2488_p6 }
  0xf4   : > { %2054 = vmatpush.msk.msrb.mxu2 %vm374_vm0, %v368_v12  ;;  %2056 = vmatpush.msk.msrb.mxu3 %vm374_vm0, %v369_v13  ;;  %v367_v15 = vld.sshfl [vmem:[#allocation1 + $0x28] sm:$0xff pattern:$0x75316420] }
  0xf5   : > { %2050 = vmatpush.msk.msrb.mxu0 %vm374_vm0, %v366_v14  ;;  %2052 = vmatpush.msk.msrb.mxu1 %vm374_vm0, %v367_v15  ;;  %556 = vst [vmem:[#allocation1 + $0x20] ss:$2 sm:$0xff] %v346_v3  ;;  %p2491_p12 = pnand %p2490_p1, %p2486_p9 }
  0xf7   : > { %v559_v16 = vld.sshfl [vmem:[#allocation1] sm:$0xff pattern:$0x75316420]  ;;  %v560_v17 = vld.sshfl [vmem:[#allocation1 + $0x8] sm:$0xff pattern:$0x75316420] }
  0xf8   : > { %2058 = vmatpush.msk.msra.mxu0 %vm374_vm0, %v559_v16  ;;  %2060 = vmatpush.msk.msra.mxu1 %vm374_vm0, %v560_v17  ;;  %756 = vst [vmem:[#allocation1] ss:$2 sm:$0xff] %v346_v3 }
  0xf9   : > { %2051 = vmatmul.msk.f32.vlgmr.msrb.gmra.mxu0 %vm370_vm1, %v2041_v7  ;;  %v561_v19 = vld.sshfl [vmem:[#allocation1 + $0x10] sm:$0xff pattern:$0x75316420]  ;;  %v562_v20 = vld.sshfl [vmem:[#allocation1 + $0x18] sm:$0xff pattern:$0x75316420] }
  0xfa   : > { %2053 = vmatmul.msk.f32.vlgmr.msrb.gmra.mxu1 %vm370_vm1, %v2041_v7  ;;  %2062 = vmatpush.msk.msra.mxu2 %vm374_vm0, %v561_v19  ;;  %758 = vst [vmem:[#allocation1 + $0x10] ss:$2 sm:$0xff] %v347_v5  ;;  %v565_v21 = vld.sshfl [vmem:[#allocation1 + $0x30] sm:$0xff pattern:$0x75316420] }
  0xfb   : > { %2055 = vmatmul.msk.f32.vlgmr.msrb.gmra.mxu2 %vm370_vm1, %v2041_v7  ;;  %2057 = vmatmul.msk.f32.vlgmr.msrb.gmra.mxu3 %vm370_vm1, %v2041_v7  ;;  %v566_v22 = vld.sshfl [vmem:[#allocation1 + $0x38] sm:$0xff pattern:$0x75316420] }
  0xfc   : > { %2064 = vmatpush.msk.msra.mxu3 %vm374_vm0, %v562_v20  ;;  %2070 = vmatpush.msk.msrb.mxu2 %vm374_vm0, %v565_v21  ;;  %762 = vst [vmem:[#allocation1 + $0x30] ss:$2 sm:$0xff] %v2956_v18  ;;  %v563_v23 = vld.sshfl [vmem:[#allocation1 + $0x20] sm:$0xff pattern:$0x75316420] }
  0xfd   : > { %2066 = vmatpush.msk.msrb.mxu0 %vm374_vm0, %v563_v23  ;;  %v564_v24 = vld.sshfl [vmem:[#allocation1 + $0x28] sm:$0xff pattern:$0x75316420] }
  0xfe   : > { %2072 = vmatpush.msk.msrb.mxu3 %vm374_vm0, %v566_v22  ;;  %2068 = vmatpush.msk.msrb.mxu1 %vm374_vm0, %v564_v24  ;;  %760 = vst [vmem:[#allocation1 + $0x20] ss:$2 sm:$0xff] %v2933_v4 }
  0xff   : > { %v763_v26 = vld.sshfl [vmem:[#allocation1] sm:$0xff pattern:$0x75316420]  ;;  %v764_v27 = vld.sshfl [vmem:[#allocation1 + $0x8] sm:$0xff pattern:$0x75316420] }
 0x100   : > { %968 = vst [vmem:[#allocation1] ss:$2 sm:$0xff] %v347_v5 }
 0x101   : > { %2059 = vmatmul.msk.f32.vlgmr.msra.gmra.mxu0 %vm370_vm1, %v340_v25  ;;  %v765_v29 = vld.sshfl [vmem:[#allocation1 + $0x10] sm:$0xff pattern:$0x75316420]  ;;  %v766_v30 = vld.sshfl [vmem:[#allocation1 + $0x18] sm:$0xff pattern:$0x75316420] }
 0x102   : > { %2061 = vmatmul.msk.f32.vlgmr.msra.gmra.mxu1 %vm370_vm1, %v340_v25  ;;  %970 = vst [vmem:[#allocation1 + $0x10] ss:$2 sm:$0xff] %v2933_v4  ;;  %2075 = vmatpush.msk.msra.mxu0 %vm374_vm0, %v763_v26 }
 0x103   : > { %2063 = vmatmul.msk.f32.vlgmr.msra.gmra.mxu2 %vm370_vm1, %v340_v25  ;;  %2065 = vmatmul.msk.f32.vlgmr.msra.gmra.mxu3 %vm370_vm1, %v340_v25  ;;  %v769_v31 = vld.sshfl [vmem:[#allocation1 + $0x30] sm:$0xff pattern:$0x75316420]  ;;  %v770_v32 = vld.sshfl [vmem:[#allocation1 + $0x38] sm:$0xff pattern:$0x75316420] }
 0x104   : > { %2079 = vmatpush.msk.msra.mxu2 %vm374_vm0, %v765_v29  ;;  %2081 = vmatpush.msk.msra.mxu3 %vm374_vm0, %v766_v30  ;;  %974 = vst [vmem:[#allocation1 + $0x30] ss:$2 sm:$0xff] %v2974_v28 }
 0x105   : > { %2077 = vmatpush.msk.msra.mxu1 %vm374_vm0, %v764_v27  ;;  %v767_v33 = vld.sshfl [vmem:[#allocation1 + $0x20] sm:$0xff pattern:$0x75316420]  ;;  %v768_v34 = vld.sshfl [vmem:[#allocation1 + $0x28] sm:$0xff pattern:$0x75316420] }
 0x106   : > { %972 = vst [vmem:[#allocation1 + $0x20] ss:$2 sm:$0xff] %v2956_v18 }
 0x107   : > { %v975_v35 = vld.sshfl [vmem:[#allocation1] sm:$0xff pattern:$0x75316420]  ;;  %v976_v36 = vld.sshfl [vmem:[#allocation1 + $0x8] sm:$0xff pattern:$0x75316420] }
 0x108   : > { %1180 = vst [vmem:[#allocation1] ss:$2 sm:$0xff] %v2933_v4 }
 0x109   : > { %2067 = vmatmul.msk.f32.vlgmr.msrb.gmra.mxu0 %vm370_vm1, %v340_v25  ;;  %v977_v38 = vld.sshfl [vmem:[#allocation1 + $0x10] sm:$0xff pattern:$0x75316420]  ;;  %v978_v39 = vld.sshfl [vmem:[#allocation1 + $0x18] sm:$0xff pattern:$0x75316420] }
 0x10a   : > { %2069 = vmatmul.msk.f32.vlgmr.msrb.gmra.mxu1 %vm370_vm1, %v340_v25  ;;  %2083 = vmatpush.msk.msrb.mxu0 %vm374_vm0, %v767_v33  ;;  %1182 = vst [vmem:[#allocation1 + $0x10] ss:$2 sm:$0xff] %v2956_v18 }
 0x10b   : > { %2071 = vmatmul.msk.f32.vlgmr.msrb.gmra.mxu2 %vm370_vm1, %v340_v25  ;;  %2073 = vmatmul.msk.f32.vlgmr.msrb.gmra.mxu3 %vm370_vm1, %v340_v25  ;;  %v981_v40 = vld.sshfl [vmem:[#allocation1 + $0x30] sm:$0xff pattern:$0x75316420]  ;;  %v982_v41 = vld.sshfl [vmem:[#allocation1 + $0x38] sm:$0xff pattern:$0x75316420] }
 0x10c   : > { %2087 = vmatpush.msk.msrb.mxu2 %vm374_vm0, %v769_v31  ;;  %2089 = vmatpush.msk.msrb.mxu3 %vm374_vm0, %v770_v32  ;;  %1186 = vst [vmem:[#allocation1 + $0x30] ss:$2 sm:$0xff] %v1173_v37 }
 0x10d   : > { %2085 = vmatpush.msk.msrb.mxu1 %vm374_vm0, %v768_v34  ;;  %v979_v42 = vld.sshfl [vmem:[#allocation1 + $0x20] sm:$0xff pattern:$0x75316420]  ;;  %v980_v43 = vld.sshfl [vmem:[#allocation1 + $0x28] sm:$0xff pattern:$0x75316420] }
 0x10e   : > { %1184 = vst [vmem:[#allocation1 + $0x20] ss:$2 sm:$0xff] %v2974_v28 }
 0x10f   : > { %v1187_v45 = vld.sshfl [vmem:[#allocation1] sm:$0xff pattern:$0x75316420]  ;;  %v1188_v46 = vld.sshfl [vmem:[#allocation1 + $0x8] sm:$0xff pattern:$0x75316420] }
 0x110   : > { %1392 = vst [vmem:[#allocation1] ss:$2 sm:$0xff] %v2956_v18 }
 0x111   : > { %2076 = vmatmul.msk.f32.vlgmr.msra.gmra.mxu0 %vm370_vm1, %v2074_v44  ;;  %v1189_v47 = vld.sshfl [vmem:[#allocation1 + $0x10] sm:$0xff pattern:$0x75316420]  ;;  %v1190_v48 = vld.sshfl [vmem:[#allocation1 + $0x18] sm:$0xff pattern:$0x75316420] }
 0x112   : > { %2078 = vmatmul.msk.f32.vlgmr.msra.gmra.mxu1 %vm370_vm1, %v2074_v44  ;;  %2092 = vmatpush.msk.msra.mxu0 %vm374_vm0, %v975_v35  ;;  %1394 = vst [vmem:[#allocation1 + $0x10] ss:$2 sm:$0xff] %v2974_v28 }
 0x113   : > { %2080 = vmatmul.msk.f32.vlgmr.msra.gmra.mxu2 %vm370_vm1, %v2074_v44  ;;  %2082 = vmatmul.msk.f32.vlgmr.msra.gmra.mxu3 %vm370_vm1, %v2074_v44  ;;  %v1193_v56 = vld.sshfl [vmem:[#allocation1 + $0x30] sm:$0xff pattern:$0x75316420]  ;;  %v1194_v57 = vld.sshfl [vmem:[#allocation1 + $0x38] sm:$0xff pattern:$0x75316420] }
 0x114   : > { %2096 = vmatpush.msk.msra.mxu2 %vm374_vm0, %v977_v38  ;;  %2098 = vmatpush.msk.msra.mxu3 %vm374_vm0, %v978_v39  ;;  %1398 = vst [vmem:[#allocation1 + $0x30] ss:$2 sm:$0xff] %v1385_v58 }
 0x115   : > { %2094 = vmatpush.msk.msra.mxu1 %vm374_vm0, %v976_v36  ;;  %v1191_v49 = vld.sshfl [vmem:[#allocation1 + $0x20] sm:$0xff pattern:$0x75316420]  ;;  %v1192_v50 = vld.sshfl [vmem:[#allocation1 + $0x28] sm:$0xff pattern:$0x75316420] }
 0x116   : > { %1396 = vst [vmem:[#allocation1 + $0x20] ss:$2 sm:$0xff] %v1173_v37 }
 0x117   : > { %v1399_v53 = vld.sshfl [vmem:[#allocation1] sm:$0xff pattern:$0x75316420]  ;;  %v1400_v54 = vld.sshfl [vmem:[#allocation1 + $0x8] sm:$0xff pattern:$0x75316420] }
 0x118   : > { %1604 = vst [vmem:[#allocation1] ss:$2 sm:$0xff] %v2974_v28 }
 0x119   : > { %2084 = vmatmul.msk.f32.vlgmr.msrb.gmra.mxu0 %vm370_vm1, %v2074_v44  ;;  %v1401_v51 = vld.sshfl [vmem:[#allocation1 + $0x10] sm:$0xff pattern:$0x75316420]  ;;  %v1402_v52 = vld.sshfl [vmem:[#allocation1 + $0x18] sm:$0xff pattern:$0x75316420] }
 0x11a   : > { %2086 = vmatmul.msk.f32.vlgmr.msrb.gmra.mxu1 %vm370_vm1, %v2074_v44  ;;  %2100 = vmatpush.msk.msrb.mxu0 %vm374_vm0, %v979_v42  ;;  %1606 = vst [vmem:[#allocation1 + $0x10] ss:$2 sm:$0xff] %v1173_v37 }
 0x11b   : > { %2088 = vmatmul.msk.f32.vlgmr.msrb.gmra.mxu2 %vm370_vm1, %v2074_v44  ;;  %2090 = vmatmul.msk.f32.vlgmr.msrb.gmra.mxu3 %vm370_vm1, %v2074_v44  ;;  %v1405_v62 = vld.sshfl [vmem:[#allocation1 + $0x30] sm:$0xff pattern:$0x75316420]  ;;  %v1406_v63 = vld.sshfl [vmem:[#allocation1 + $0x38] sm:$0xff pattern:$0x75316420] }
 0x11c   : > { %2104 = vmatpush.msk.msrb.mxu2 %vm374_vm0, %v981_v40  ;;  %2106 = vmatpush.msk.msrb.mxu3 %vm374_vm0, %v982_v41  ;;  %1610 = vst [vmem:[#allocation1 + $0x30] ss:$2 sm:$0xff] %v1597_v0 }
 0x11d   : > { %2102 = vmatpush.msk.msrb.mxu1 %vm374_vm0, %v980_v43  ;;  %v1403_v59 = vld.sshfl [vmem:[#allocation1 + $0x20] sm:$0xff pattern:$0x75316420]  ;;  %v1404_v60 = vld.sshfl [vmem:[#allocation1 + $0x28] sm:$0xff pattern:$0x75316420] }
 0x11e   : > { %1608 = vst [vmem:[#allocation1 + $0x20] ss:$2 sm:$0xff] %v1385_v58 }
 0x11f   : > { %v1611_v2 = vld.sshfl [vmem:[#allocation1] sm:$0xff pattern:$0x75316420]  ;;  %v1612_v5 = vld.sshfl [vmem:[#allocation1 + $0x8] sm:$0xff pattern:$0x75316420] }
 0x121   : > { %2093 = vmatmul.msk.f32.vlgmr.msra.gmra.mxu0 %vm370_vm1, %v2091_v55  ;;  %v1613_v3 = vld.sshfl [vmem:[#allocation1 + $0x10] sm:$0xff pattern:$0x75316420]  ;;  %v1614_v4 = vld.sshfl [vmem:[#allocation1 + $0x18] sm:$0xff pattern:$0x75316420] }
 0x122   : > { %2095 = vmatmul.msk.f32.vlgmr.msra.gmra.mxu1 %vm370_vm1, %v2091_v55  ;;  %2109 = vmatpush.msk.msra.mxu0 %vm374_vm0, %v1187_v45 }
 0x123   : > { %2097 = vmatmul.msk.f32.vlgmr.msra.gmra.mxu2 %vm370_vm1, %v2091_v55  ;;  %2099 = vmatmul.msk.f32.vlgmr.msra.gmra.mxu3 %vm370_vm1, %v2091_v55  ;;  %v1617_v7 = vld.sshfl [vmem:[#allocation1 + $0x30] sm:$0xff pattern:$0x75316420]  ;;  %v1618_v8 = vld.sshfl [vmem:[#allocation1 + $0x38] sm:$0xff pattern:$0x75316420] }
 0x124   : > { %2113 = vmatpush.msk.msra.mxu2 %vm374_vm0, %v1189_v47  ;;  %2115 = vmatpush.msk.msra.mxu3 %vm374_vm0, %v1190_v48 }
 0x125   : > { %2111 = vmatpush.msk.msra.mxu1 %vm374_vm0, %v1188_v46  ;;  %v1615_v6 = vld.sshfl [vmem:[#allocation1 + $0x20] sm:$0xff pattern:$0x75316420]  ;;  %v1616_v9 = vld.sshfl [vmem:[#allocation1 + $0x28] sm:$0xff pattern:$0x75316420] }
 0x129   : > { %2101 = vmatmul.msk.f32.vlgmr.msrb.gmra.mxu0 %vm370_vm1, %v2091_v55 }
 0x12a   : > { %2103 = vmatmul.msk.f32.vlgmr.msrb.gmra.mxu1 %vm370_vm1, %v2091_v55  ;;  %2117 = vmatpush.msk.msrb.mxu0 %vm374_vm0, %v1191_v49 }
 0x12b   : > { %2105 = vmatmul.msk.f32.vlgmr.msrb.gmra.mxu2 %vm370_vm1, %v2091_v55  ;;  %2107 = vmatmul.msk.f32.vlgmr.msrb.gmra.mxu3 %vm370_vm1, %v2091_v55 }
 0x12c   : > { %2121 = vmatpush.msk.msrb.mxu2 %vm374_vm0, %v1193_v56  ;;  %2123 = vmatpush.msk.msrb.mxu3 %vm374_vm0, %v1194_v57 }
 0x12d   : > { %2119 = vmatpush.msk.msrb.mxu1 %vm374_vm0, %v1192_v50 }
 0x131   : > { %2110 = vmatmul.msk.f32.vlgmr.msra.gmra.mxu0 %vm370_vm1, %v2108_v61 }
 0x132   : > { %2112 = vmatmul.msk.f32.vlgmr.msra.gmra.mxu1 %vm370_vm1, %v2108_v61  ;;  %2126 = vmatpush.msk.msra.mxu0 %vm374_vm0, %v1399_v53 }
 0x133   : > { %2114 = vmatmul.msk.f32.vlgmr.msra.gmra.mxu2 %vm370_vm1, %v2108_v61  ;;  %2116 = vmatmul.msk.f32.vlgmr.msra.gmra.mxu3 %vm370_vm1, %v2108_v61 }
 0x134   : > { %2130 = vmatpush.msk.msra.mxu2 %vm374_vm0, %v1401_v51  ;;  %2132 = vmatpush.msk.msra.mxu3 %vm374_vm0, %v1402_v52 }
 0x135   : > { %2128 = vmatpush.msk.msra.mxu1 %vm374_vm0, %v1400_v54 }
 0x139   : > { %2118 = vmatmul.msk.f32.vlgmr.msrb.gmra.mxu0 %vm370_vm1, %v2108_v61 }
 0x13a   : > { %2120 = vmatmul.msk.f32.vlgmr.msrb.gmra.mxu1 %vm370_vm1, %v2108_v61  ;;  %2134 = vmatpush.msk.msrb.mxu0 %vm374_vm0, %v1403_v59 }
 0x13b   : > { %2122 = vmatmul.msk.f32.vlgmr.msrb.gmra.mxu2 %vm370_vm1, %v2108_v61  ;;  %2124 = vmatmul.msk.f32.vlgmr.msrb.gmra.mxu3 %vm370_vm1, %v2108_v61 }
 0x13c   : > { %2138 = vmatpush.msk.msrb.mxu2 %vm374_vm0, %v1405_v62  ;;  %2140 = vmatpush.msk.msrb.mxu3 %vm374_vm0, %v1406_v63 }
 0x13d   : > { %2136 = vmatpush.msk.msrb.mxu1 %vm374_vm0, %v1404_v60 }
 0x141   : > { %2127 = vmatmul.msk.f32.vlgmr.msra.gmra.mxu0 %vm370_vm1, %v2125_v1 }
 0x142   : > { %2129 = vmatmul.msk.f32.vlgmr.msra.gmra.mxu1 %vm370_vm1, %v2125_v1  ;;  %2143 = vmatpush.msk.msra.mxu0 %vm374_vm0, %v1611_v2 }
 0x143   : > { %2131 = vmatmul.msk.f32.vlgmr.msra.gmra.mxu2 %vm370_vm1, %v2125_v1  ;;  %2133 = vmatmul.msk.f32.vlgmr.msra.gmra.mxu3 %vm370_vm1, %v2125_v1 }
 0x144   : > { %2147 = vmatpush.msk.msra.mxu2 %vm374_vm0, %v1613_v3  ;;  %2149 = vmatpush.msk.msra.mxu3 %vm374_vm0, %v1614_v4 }
 0x145   : > { %2145 = vmatpush.msk.msra.mxu1 %vm374_vm0, %v1612_v5 }
 0x149   : > { %2135 = vmatmul.msk.f32.vlgmr.msrb.gmra.mxu0 %vm370_vm1, %v2125_v1 }
 0x14a   : > { %2137 = vmatmul.msk.f32.vlgmr.msrb.gmra.mxu1 %vm370_vm1, %v2125_v1  ;;  %2151 = vmatpush.msk.msrb.mxu0 %vm374_vm0, %v1615_v6 }
 0x14b   : > { %2139 = vmatmul.msk.f32.vlgmr.msrb.gmra.mxu2 %vm370_vm1, %v2125_v1  ;;  %2141 = vmatmul.msk.f32.vlgmr.msrb.gmra.mxu3 %vm370_vm1, %v2125_v1 }
 0x14c   : > { %2155 = vmatpush.msk.msrb.mxu2 %vm374_vm0, %v1617_v7  ;;  %2157 = vmatpush.msk.msrb.mxu3 %vm374_vm0, %v1618_v8 }
 0x14d   : > { %2153 = vmatpush.msk.msrb.mxu1 %vm374_vm0, %v1616_v9 }
 0x151   : > { %2144 = vmatmul.msk.f32.vlgmr.msra.gmra.mxu0 %vm370_vm1, %v2142_v10 }
 0x152   : > { %2146 = vmatmul.msk.f32.vlgmr.msra.gmra.mxu1 %vm370_vm1, %v2142_v10 }
 0x153   : > { %2148 = vmatmul.msk.f32.vlgmr.msra.gmra.mxu2 %vm370_vm1, %v2142_v10  ;;  %2150 = vmatmul.msk.f32.vlgmr.msra.gmra.mxu3 %vm370_vm1, %v2142_v10 }
 0x159   : > { %2152 = vmatmul.msk.f32.vlgmr.msrb.gmra.mxu0 %vm370_vm1, %v2142_v10 }
 0x15a   : > { %2154 = vmatmul.msk.f32.vlgmr.msrb.gmra.mxu1 %vm370_vm1, %v2142_v10 }
 0x15b   : > { %2156 = vmatmul.msk.f32.vlgmr.msrb.gmra.mxu2 %vm370_vm1, %v2142_v10  ;;  %2158 = vmatmul.msk.f32.vlgmr.msrb.gmra.mxu3 %vm370_vm1, %v2142_v10 }
 0x16e   : > { %v408_v11 = vpop.f32.mrf.mxu0 }
 0x16f   : > { %v428_v12 = vpop.f32.mrf.mxu1 }
 0x176   : > { %v448_v13 = vpop.f32.mrf.mxu2  ;;  %v468_v14 = vpop.f32.mrf.mxu3 }
 0x177   : > { %v488_v15 = vpop.f32.mrf.mxu0  ;;  %v508_v16 = vpop.f32.mrf.mxu1 }
 0x17e   : > { %v528_v17 = vpop.f32.mrf.mxu2  ;;  %v548_v18 = vpop.f32.mrf.mxu3 }
 0x17f   : > { %v603_v19 = vpop.f32.mrf.mxu0  ;;  %v623_v20 = vpop.f32.mrf.mxu1 }
 0x180   : > { %v604_v21 = vadd.f32 %v603_v19, %v408_v11  ;;  %v624_v22 = vadd.f32 %v623_v20, %v428_v12 }
 0x186   : > { %v643_v23 = vpop.f32.mrf.mxu2  ;;  %v663_v24 = vpop.f32.mrf.mxu3 }
 0x187   : > { %v644_v25 = vadd.f32 %v643_v23, %v448_v13  ;;  %v664_v26 = vadd.f32 %v663_v24, %v468_v14  ;;  %v683_v27 = vpop.f32.mrf.mxu0  ;;  %v703_v28 = vpop.f32.mrf.mxu1 }
 0x188   : > { %v684_v29 = vadd.f32 %v683_v27, %v488_v15  ;;  %v704_v30 = vadd.f32 %v703_v28, %v508_v16 }
 0x18e   : > { %v723_v31 = vpop.f32.mrf.mxu2  ;;  %v743_v32 = vpop.f32.mrf.mxu3 }
 0x18f   : > { %v3091_v33 = vadd.f32 %v723_v31, %v528_v17  ;;  %v3093_v34 = vadd.f32 %v743_v32, %v548_v18  ;;  %v807_v35 = vpop.f32.mrf.mxu0  ;;  %v827_v36 = vpop.f32.mrf.mxu1 }
 0x190   : > { %v950_v1 = vadd.f32 %v807_v35, %v604_v21  ;;  %v951_v2 = vadd.f32 %v827_v36, %v624_v22 }
 0x196   : > { %v847_v37 = vpop.f32.mrf.mxu2  ;;  %v867_v38 = vpop.f32.mrf.mxu3 }
 0x197   : > { %v887_v39 = vpop.f32.mrf.mxu0  ;;  %v907_v40 = vpop.f32.mrf.mxu1  ;;  %v952_v11 = vadd.f32 %v847_v37, %v644_v25  ;;  %v953_v12 = vadd.f32 %v867_v38, %v664_v26 }
 0x198   : > { %v954_v15 = vadd.f32 %v887_v39, %v684_v29  ;;  %v955_v16 = vadd.f32 %v907_v40, %v704_v30 }
 0x19e   : > { %v927_v41 = vpop.f32.mrf.mxu2  ;;  %v947_v42 = vpop.f32.mrf.mxu3 }
 0x19f   : > { %v1019_v43 = vpop.f32.mrf.mxu0  ;;  %v1039_v44 = vpop.f32.mrf.mxu1  ;;  %v956_v35 = vadd.f32 %v927_v41, %v3091_v33  ;;  %v957_v36 = vadd.f32 %v947_v42, %v3093_v34 }
 0x1a0   : > { %v1162_v3 = vadd.f32 %v1019_v43, %v950_v1  ;;  %v1163_v4 = vadd.f32 %v1039_v44, %v951_v2 }
 0x1a6   : > { %v1059_v45 = vpop.f32.mrf.mxu2  ;;  %v1079_v46 = vpop.f32.mrf.mxu3 }
 0x1a7   : > { %v1099_v47 = vpop.f32.mrf.mxu0  ;;  %v1119_v48 = vpop.f32.mrf.mxu1  ;;  %v1164_v19 = vadd.f32 %v1059_v45, %v952_v11  ;;  %v1165_v20 = vadd.f32 %v1079_v46, %v953_v12 }
 0x1a8   : > { %v1166_v21 = vadd.f32 %v1099_v47, %v954_v15  ;;  %v1167_v22 = vadd.f32 %v1119_v48, %v955_v16 }
 0x1ae   : > { %v1139_v49 = vpop.f32.mrf.mxu2  ;;  %v1159_v50 = vpop.f32.mrf.mxu3 }
 0x1af   : > { %v1231_v51 = vpop.f32.mrf.mxu0  ;;  %v1251_v52 = vpop.f32.mrf.mxu1  ;;  %v1168_v45 = vadd.f32 %v1139_v49, %v956_v35  ;;  %v1169_v46 = vadd.f32 %v1159_v50, %v957_v36 }
 0x1b0   : > { %v1374_v5 = vadd.f32 %v1231_v51, %v1162_v3  ;;  %v1375_v6 = vadd.f32 %v1251_v52, %v1163_v4 }
 0x1b6   : > { %v1271_v53 = vpop.f32.mrf.mxu2  ;;  %v1291_v54 = vpop.f32.mrf.mxu3 }
 0x1b7   : > { %v1311_v55 = vpop.f32.mrf.mxu0  ;;  %v1331_v56 = vpop.f32.mrf.mxu1  ;;  %v1376_v23 = vadd.f32 %v1271_v53, %v1164_v19  ;;  %v1377_v24 = vadd.f32 %v1291_v54, %v1165_v20 }
 0x1b8   : > { %v1378_v27 = vadd.f32 %v1311_v55, %v1166_v21  ;;  %v1379_v25 = vadd.f32 %v1331_v56, %v1167_v22 }
 0x1be   : > { %v1351_v57 = vpop.f32.mrf.mxu2  ;;  %v1371_v58 = vpop.f32.mrf.mxu3 }
 0x1bf   : > { %v1443_v59 = vpop.f32.mrf.mxu0  ;;  %v1463_v60 = vpop.f32.mrf.mxu1  ;;  %v1380_v33 = vadd.f32 %v1351_v57, %v1168_v45  ;;  %v1381_v34 = vadd.f32 %v1371_v58, %v1169_v46 }
 0x1c0   : > { %v1586_v7 = vadd.f32 %v1443_v59, %v1374_v5  ;;  %v1587_v8 = vadd.f32 %v1463_v60, %v1375_v6 }
 0x1c6   : > { %v1483_v61 = vpop.f32.mrf.mxu2  ;;  %v1503_v62 = vpop.f32.mrf.mxu3 }
 0x1c7   : > { %v1523_v63 = vpop.f32.mrf.mxu0  ;;  %v1543_v0 = vpop.f32.mrf.mxu1  ;;  %v1588_v26 = vadd.f32 %v1483_v61, %v1376_v23  ;;  %v1589_v28 = vadd.f32 %v1503_v62, %v1377_v24 }
 0x1c8   : > { %v1590_v31 = vadd.f32 %v1523_v63, %v1378_v27  ;;  %v1591_v29 = vadd.f32 %v1543_v0, %v1379_v25 }
 0x1ce   : > { %v1563_v9 = vpop.f32.mrf.mxu2  ;;  %v1583_v10 = vpop.f32.mrf.mxu3 }
 0x1cf   : > { %v1655_v13 = vpop.f32.mrf.mxu0  ;;  %v1675_v14 = vpop.f32.mrf.mxu1  ;;  %v1592_v41 = vadd.f32 %v1563_v9, %v1380_v33  ;;  %v1593_v42 = vadd.f32 %v1583_v10, %v1381_v34 }
 0x1d0   : > { %v1798_v17 = vadd.f32 %v1655_v13, %v1586_v7  ;;  %v1799_v18 = vadd.f32 %v1675_v14, %v1587_v8 }
 0x1d2   : > { %1806 = vst [vmem:[%s2905_s26] sm:$0xff] %v1798_v17 }
 0x1d3   : > { %1807 = vst [vmem:[%s2905_s26 + $0x8] sm:$0xff] %v1799_v18 }
 0x1d6   : > { %v1695_v30 = vpop.f32.mrf.mxu2  ;;  %v1715_v32 = vpop.f32.mrf.mxu3 }
 0x1d7   : > { %v1800_v37 = vadd.f32 %v1695_v30, %v1588_v26  ;;  %v1801_v38 = vadd.f32 %v1715_v32, %v1589_v28  ;;  %v1735_v39 = vpop.f32.mrf.mxu0  ;;  %v1755_v40 = vpop.f32.mrf.mxu1 }
 0x1d8   : > { %v1802_v43 = vadd.f32 %v1735_v39, %v1590_v31  ;;  %v1803_v44 = vadd.f32 %v1755_v40, %v1591_v29 }
 0x1d9   : > { %1808 = vst [vmem:[%s2905_s26 + $0x10] sm:$0xff] %v1800_v37 }
 0x1da   : > { %1809 = vst [vmem:[%s2905_s26 + $0x18] sm:$0xff] %v1801_v38 }
 0x1db   : > { %1810 = vst [vmem:[%s2905_s26 + $0x20] sm:$0xff] %v1802_v43 }
 0x1dc   : > { %1811 = vst [vmem:[%s2905_s26 + $0x28] sm:$0xff] %v1803_v44 }
 0x1de   : > { %v1775_v47 = vpop.f32.mrf.mxu2  ;;  %v1795_v48 = vpop.f32.mrf.mxu3 }
 0x1df   : > { %v1804_v49 = vadd.f32 %v1775_v47, %v1592_v41  ;;  %v1805_v50 = vadd.f32 %v1795_v48, %v1593_v42 }
 0x1e1   : > { %1812 = vst [vmem:[%s2905_s26 + $0x30] sm:$0xff] %v1804_v49 }
 0x1e2   : > { %1813 = vst [vmem:[%s2905_s26 + $0x38] sm:$0xff] %v1805_v50 }
 0x1e3   : > { %2494 = shalt.err (!%p2491_p12)
}
 0x1e4   : > { %2194 = dma.vmem_to_hbm [thread:$0]  (%p3201_p4), %s1831_s18, 1024, %s1833_s14, %s1815_s17  }
 0x1e5 PF: > { %s3202_s26 = sld [smem:[#allocation28_spill]] }
 0x1e6   : > { %s3203_s6 = sld [smem:[#allocation24_spill]] }
 0x1e7   : > { %s3204_s27 = sld [smem:[#allocation32_spill]] }
 0x1eb   : > { %p2224_p11 = scmp.ge.s32.totalorder %s3202_s26, 2 }
 0x1ec   : > { %s1844_s22 = sand.u32 1, %s3203_s6  }
 0x1ed   : > { %p3205_p3 = scmp.ne.s32.totalorder %s3204_s27, 0  ;;  %s1845_s24 = scalar_lea.sflag [#allocation5], %s1844_s22 }
 0x1ef   : > { %p2213_p13 = pnand %p2224_p11, %p3205_p3 }
 0x1f1   : > { %p2214_p8 = pneg %p2213_p13 }
 0x1f3   : > { %2538 = dma.done.wait (%p2214_p8), %s1845_s24, 1024  }
 0x1f4   : > { %2540 = vsyncadd (%p2214_p8), %s1845_s24, 4294966272  ;;  %s15_s16 = sadd.s32 1, %s3202_s26   ;;  %s3206_s13 = sld [smem:[#allocation25_spill]] }
 0x1f5   : > { %p12_p2 = scmp.ge.s32.totalorder %s15_s16, 6   ;;  %s3207_s11 = sld [smem:[#allocation33_spill]] }
 0x1f6   : > { %s3208_s12 = sld [smem:[#allocation26_spill]]  ;;  %s3212_s9 = smov %s2547_s10 }
 0x1f7   : > { %s3209_s30 = sld [smem:[#allocation27_spill]] }
 0x1f8   : > { %s3210_s14 = sld [smem:[#allocation29_spill]] }
 0x1f9   : > { %s3211_s15 = sld [smem:[#allocation31_spill]]  ;;  %14 = sbr.rel (!%p12_p2) target bundleno = 5 (0x5), region = 176 }
 0x1fa   : > { %s3213_s10 = smov %s3206_s13 }
 0x1fd   : > { %s3214_s13 = smov %s3209_s30 }
 0x1fe   :  { %1851 = vsyncpa [#allocation5], 1 }
 0x1ff   :  { %1853 = vsyncpa [#allocation5 + $0x1], 1 }
 0x200   :  { %1854 = vsyncmov [#allocation3] }
 0x203   :  { %s1855_s20 = vpop.sfrf %1854 }
 0x204   :  { %p2165_p10 = scmp.ne.s32.totalorder %s1855_s20, 0 }
 0x206   :  { %1859 = shalt.err (%p2165_p10)  }
 0x207   :  { %1861 = vsyncmov [#allocation3 + $0x1] }
 0x20a   :  { %s1862_s8 = vpop.sfrf %1861 }
 0x20b   :  { %p2166_p0 = scmp.ne.s32.totalorder %s1862_s8, 0 }
 0x20d   :  { %1866 = shalt.err (%p2166_p0)  }
 0x20e   :  { %1868 = vsyncmov [#allocation3 + $0x2] }
 0x211   :  { %s1869_s19 = vpop.sfrf %1868 }
 0x212   :  { %p2167_p4 = scmp.ne.s32.totalorder %s1869_s19, 0 }
 0x214   :  { %1873 = shalt.err (%p2167_p4)  }
 0x215   :  { %1875 = vsyncmov [#allocation3 + $0x3] }
 0x218   :  { %s1876_s7 = vpop.sfrf %1875 }
 0x219   :  { %p2168_p7 = scmp.ne.s32.totalorder %s1876_s7, 0 }
 0x21b   :  { %1880 = shalt.err (%p2168_p7)  }
 0x21c   :  { %1882 = vsyncmov [#allocation3 + $0x4] }
 0x21f   :  { %s1883_s3 = vpop.sfrf %1882 }
 0x220   :  { %p2169_p9 = scmp.ne.s32.totalorder %s1883_s3, 0 }
 0x222   :  { %1887 = shalt.err (%p2169_p9)  }
 0x223   :  { %1889 = vsyncmov [#allocation3 + $0x5] }
 0x226   :  { %s1890_s0 = vpop.sfrf %1889 }
 0x227   :  { %p2170_p6 = scmp.ne.s32.totalorder %s1890_s0, 0 }
 0x229   :  { %1894 = shalt.err (%p2170_p6)  }

</bundles_post_ra>
